<compile_context>
chip_gen: v5e
topology: v5e:2x2
jax: 0.10.0
libtpu: 0.0.40
codegen_flags: <defaults>
</compile_context>

<pallas_src>
import jax
import jax.numpy as jnp
from jax import lax
from jax.experimental import pallas as pl
from jax.experimental.pallas import tpu as pltpu


# ----------------------------- fused Pallas kernel --------------------------

def _fused_loss_kernel(
    w_ref,                                             # (1, J)   f32
    reg_lo_ref, reg_lt_ref, reg_ro_ref, reg_rt_ref,    # (B, J)   f32
    bin_l_ref, bin_r_ref,                              # (B, J, Cb) f32
    mp_l_ref, mp_r_ref,                                # (B, J, Cm) f32
    g_l_b_ref, g_r_b_ref,                              # (B, J)   i32
    g_l_mp_ref, g_r_mp_ref,                            # (B, J)   i32
    feat_l_ref, feat_r_ref,                            # (B, 2, D) f32
    centers_ref,                                       # (4, K, D) f32
    out_ref,                                           # (1, 1)   f32 in SMEM
):
    B = reg_lo_ref.shape[0]
    inv_b = 1.0 / B
    w = w_ref[...]                                     # (1, J)

    # ---------------- weighted per-joint MSE (left + right) ----------------
    dl = reg_lo_ref[...] - reg_lt_ref[...]
    dr = reg_ro_ref[...] - reg_rt_ref[...]
    sq = jnp.sum(dl * dl + dr * dr, axis=0, keepdims=True)        # (1, J)
    mse_total = (0.5 * inv_b) * jnp.sum(w * sq)                   # scalar

    # ---------------- weighted cross-entropy (4 heads) ---------------------
    def ce_head(logits, labels):
        # logits (B, J, C), labels (B, J) int32 -> scalar sum_b,j w[j]*CE[b,j]
        m = jnp.max(logits, axis=-1, keepdims=True)
        lse = m + jnp.log(jnp.sum(jnp.exp(logits - m), axis=-1, keepdims=True))
        onehot = (lax.broadcasted_iota(jnp.int32, logits.shape, 2)
                  == labels[:, :, None])
        gold = jnp.sum(jnp.where(onehot, logits, 0.0), axis=-1, keepdims=True)
        ce_bj = jnp.sum(lse - gold, axis=-1)                      # (B, J)
        return jnp.sum(w * ce_bj)                                 # scalar

    g_l_b = g_l_b_ref[...]
    g_r_b = g_r_b_ref[...]
    ce_bin = ce_head(bin_l_ref[...], g_l_b) + ce_head(bin_r_ref[...], g_r_b)
    ce_mp = (ce_head(mp_l_ref[...], g_l_mp_ref[...])
             + ce_head(mp_r_ref[...], g_r_mp_ref[...]))
    ce_total = inv_b * (1.0 * ce_bin + 2.0 * ce_mp)               # scalar

    # ---------------- center losses, 4 heads (direct picked-center form) ---
    feat_l = feat_l_ref[...]                                      # (B, 2, D)
    feat_r = feat_r_ref[...]
    centers = centers_ref[...]                                    # (4, K, D)
    K = centers.shape[1]

    def center_head(x_bd, lbl_b1, c_kd):
        # x_bd (B, D), lbl_b1 (B, 1) int32, c_kd (K, D) -> scalar
        Bc = lbl_b1.shape[0]
        onehot = (lax.broadcasted_iota(jnp.int32, (Bc, K), 1)
                  == lbl_b1).astype(jnp.float32)                  # (B, K)
        c_pick = jnp.dot(onehot, c_kd,
                         preferred_element_type=jnp.float32)      # (B, D)
        d = x_bd - c_pick
        dist = jnp.sum(d * d, axis=-1, keepdims=True)             # (B, 1)
        return jnp.sum(jnp.clip(dist, 1e-12, 1e12))               # scalar

    center_sum = (center_head(feat_l[:, 0, :], g_l_b[:, 0:1], centers[0])
                  + center_head(feat_l[:, 1, :], g_l_b[:, 1:2], centers[1])
                  + center_head(feat_r[:, 0, :], g_r_b[:, 0:1], centers[2])
                  + center_head(feat_r[:, 1, :], g_r_b[:, 1:2], centers[3]))
    center_total = (0.01 * inv_b) * center_sum                    # scalar

    # scalar SMEM store: no vreg broadcast, no HBM tile writeback
    out_ref[0, 0] = mse_total + ce_total + center_total


# ------------------------------ wrappers -------------------------------------

def init_center_params(cls_num, f_dim, key):
    # Pre-stacked (pitch_l, yaw_l, pitch_r, yaw_r) centers: one (4, K, D)
    # parameter, so no per-call jnp.stack is needed.
    return jax.random.normal(key, (4, cls_num, f_dim), jnp.float32)


def pyr_mse_loss_lrc(centers,
                     output_l, target_l, output_r, target_r,
                     out_l_b, g_l_b, out_r_b, g_r_b,
                     out_l_mp, g_l_mp, out_r_mp, g_r_mp,
                     out_l_f, out_r_f,
                     weights=(1.0, 1.0, 1.0)):
    B, J = output_l.shape
    if len(weights) < J:
        raise ValueError(f"weights has {len(weights)} entries but num_joints={J}")
    w = jnp.asarray(weights, jnp.float32)[:J][None, :]            # (1, J) const

    args = (w,
            output_l, target_l, output_r, target_r,
            out_l_b, out_r_b, out_l_mp, out_r_mp,
            g_l_b.astype(jnp.int32), g_r_b.astype(jnp.int32),
            g_l_mp.astype(jnp.int32), g_r_mp.astype(jnp.int32),
            out_l_f, out_r_f, centers)

    vmem = pl.BlockSpec(memory_space=pltpu.MemorySpace.VMEM)
    out = pl.pallas_call(
        _fused_loss_kernel,
        out_shape=jax.ShapeDtypeStruct((1, 1), jnp.float32),
        in_specs=[vmem] * len(args),
        out_specs=pl.BlockSpec(memory_space=pltpu.MemorySpace.SMEM),
    )(*args)
    return out[0, 0]


# -------------------------- pure-JAX reference -------------------------------

def _ref_ce(logits, labels):
    logp = jax.nn.log_softmax(logits, axis=-1)
    gold = jnp.take_along_axis(logp, labels[..., None], axis=-1)[..., 0]
    return -jnp.mean(gold, axis=0)                                # (J,)


def _ref_center(x, labels, centers):
    B = x.shape[0]
    x2 = jnp.sum(x * x, axis=1, keepdims=True)
    c2 = jnp.sum(centers * centers, axis=1)[None, :]
    distmat = x2 + c2 - 2.0 * x @ centers.T
    picked = jnp.take_along_axis(distmat, labels[:, None], axis=1)[:, 0]
    return jnp.sum(jnp.clip(picked, 1e-12, 1e12)) / B


def reference_loss(centers, output_l, target_l, output_r, target_r,
                   out_l_b, g_l_b, out_r_b, g_r_b,
                   out_l_mp, g_l_mp, out_r_mp, g_r_mp,
                   out_l_f, out_r_f, weights=(1.0, 1.0, 1.0)):
    J = output_l.shape[1]
    w = jnp.asarray(weights, jnp.float32)[:J]
    loss = 0.0
    loss += jnp.sum(0.5 * w * jnp.mean((output_l - target_l) ** 2, axis=0))
    loss += jnp.sum(0.5 * w * jnp.mean((output_r - target_r) ** 2, axis=0))
    loss += jnp.sum(1.0 * w * _ref_ce(out_l_b, g_l_b))
    loss += jnp.sum(1.0 * w * _ref_ce(out_r_b, g_r_b))
    loss += jnp.sum(2.0 * w * _ref_ce(out_l_mp, g_l_mp))
    loss += jnp.sum(2.0 * w * _ref_ce(out_r_mp, g_r_mp))
    loss += 0.01 * _ref_center(out_l_f[:, 0, :], g_l_b[:, 0], centers[0])
    loss += 0.01 * _ref_center(out_l_f[:, 1, :], g_l_b[:, 1], centers[1])
    loss += 0.01 * _ref_center(out_r_f[:, 0, :], g_r_b[:, 0], centers[2])
    loss += 0.01 * _ref_center(out_r_f[:, 1, :], g_r_b[:, 1], centers[3])
    return loss


# --------------------------------- main ---------------------------------------

if __name__ == "__main__":
    B, J = 8, 3          # batch, num_joints (pitch / yaw / roll; weights = [1,1,1])
    CLS = 16             # cls_num (bin classes) -> CenterLoss num_classes
    C_MP = 32            # mp head classes
    F_DIM = 32           # f_dim -> CenterLoss feat_dim

    key = jax.random.PRNGKey(0)
    ks = jax.random.split(key, 16)

    output_l = jax.random.normal(ks[0], (B, J), jnp.float32)
    target_l = jax.random.normal(ks[1], (B, J), jnp.float32)
    output_r = jax.random.normal(ks[2], (B, J), jnp.float32)
    target_r = jax.random.normal(ks[3], (B, J), jnp.float32)

    out_l_b = jax.random.normal(ks[4], (B, J, CLS), jnp.float32)
    g_l_b = jax.random.randint(ks[5], (B, J), 0, CLS, jnp.int32)
    out_r_b = jax.random.normal(ks[6], (B, J, CLS), jnp.float32)
    g_r_b = jax.random.randint(ks[7], (B, J), 0, CLS, jnp.int32)

    out_l_mp = jax.random.normal(ks[8], (B, J, C_MP), jnp.float32)
    g_l_mp = jax.random.randint(ks[9], (B, J), 0, C_MP, jnp.int32)
    out_r_mp = jax.random.normal(ks[10], (B, J, C_MP), jnp.float32)
    g_r_mp = jax.random.randint(ks[11], (B, J), 0, C_MP, jnp.int32)

    out_l_f = jax.random.normal(ks[12], (B, 2, F_DIM), jnp.float32)
    out_r_f = jax.random.normal(ks[13], (B, 2, F_DIM), jnp.float32)

    centers = init_center_params(CLS, F_DIM, ks[14])

    args = (output_l, target_l, output_r, target_r,
            out_l_b, g_l_b, out_r_b, g_r_b,
            out_l_mp, g_l_mp, out_r_mp, g_r_mp,
            out_l_f, out_r_f)

    loss_fn = jax.jit(pyr_mse_loss_lrc)
    loss = jax.block_until_ready(loss_fn(centers, *args))
    ref = jax.block_until_ready(reference_loss(centers, *args))
    assert jnp.allclose(loss, ref, rtol=1e-3, atol=1e-3), (loss, ref)

    print("KERNEL_OK")
</pallas_src>

<mosaic_0001>
module attributes {stable_mosaic.version = 11 : i64} {
  func.func @_fused_loss_kernel(%arg0: memref<1x3xf32, #tpu.memory_space<vmem>>, %arg1: memref<8x3xf32, #tpu.memory_space<vmem>>, %arg2: memref<8x3xf32, #tpu.memory_space<vmem>>, %arg3: memref<8x3xf32, #tpu.memory_space<vmem>>, %arg4: memref<8x3xf32, #tpu.memory_space<vmem>>, %arg5: memref<8x3x16xf32, #tpu.memory_space<vmem>>, %arg6: memref<8x3x16xf32, #tpu.memory_space<vmem>>, %arg7: memref<8x3x32xf32, #tpu.memory_space<vmem>>, %arg8: memref<8x3x32xf32, #tpu.memory_space<vmem>>, %arg9: memref<8x3xi32, #tpu.memory_space<vmem>>, %arg10: memref<8x3xi32, #tpu.memory_space<vmem>>, %arg11: memref<8x3xi32, #tpu.memory_space<vmem>>, %arg12: memref<8x3xi32, #tpu.memory_space<vmem>>, %arg13: memref<8x2x32xf32, #tpu.memory_space<vmem>>, %arg14: memref<8x2x32xf32, #tpu.memory_space<vmem>>, %arg15: memref<4x16x32xf32, #tpu.memory_space<vmem>>, %arg16: memref<1x1xf32, #tpu.memory_space<smem>>) attributes {dimension_semantics = [], scalar_prefetch = 0 : i64, scratch_operands = 0 : i64, tpu.core_type = #tpu.core_type<tc>} {
    %c0 = arith.constant 0 : index
    %c0_0 = arith.constant 0 : index
    %0 = vector.load %arg0[%c0, %c0_0] : memref<1x3xf32, #tpu.memory_space<vmem>>, vector<1x3xf32>
    %c0_1 = arith.constant 0 : index
    %c0_2 = arith.constant 0 : index
    %1 = vector.load %arg1[%c0_1, %c0_2] : memref<8x3xf32, #tpu.memory_space<vmem>>, vector<8x3xf32>
    %c0_3 = arith.constant 0 : index
    %c0_4 = arith.constant 0 : index
    %2 = vector.load %arg2[%c0_3, %c0_4] : memref<8x3xf32, #tpu.memory_space<vmem>>, vector<8x3xf32>
    %3 = arith.subf %1, %2 : vector<8x3xf32>
    %c0_5 = arith.constant 0 : index
    %c0_6 = arith.constant 0 : index
    %4 = vector.load %arg3[%c0_5, %c0_6] : memref<8x3xf32, #tpu.memory_space<vmem>>, vector<8x3xf32>
    %c0_7 = arith.constant 0 : index
    %c0_8 = arith.constant 0 : index
    %5 = vector.load %arg4[%c0_7, %c0_8] : memref<8x3xf32, #tpu.memory_space<vmem>>, vector<8x3xf32>
    %6 = arith.subf %4, %5 : vector<8x3xf32>
    %7 = arith.mulf %3, %3 : vector<8x3xf32>
    %8 = arith.mulf %6, %6 : vector<8x3xf32>
    %9 = arith.addf %7, %8 : vector<8x3xf32>
    %cst = arith.constant dense<0.000000e+00> : vector<3xf32>
    %10 = vector.multi_reduction <add>, %9, %cst [0] : vector<8x3xf32> to vector<3xf32>
    %11 = vector.shape_cast %10 : vector<3xf32> to vector<1x3xf32>
    %12 = arith.mulf %0, %11 : vector<1x3xf32>
    %13 = vector.shape_cast %12 : vector<1x3xf32> to vector<1x1x3xf32>
    %cst_9 = arith.constant dense<0.000000e+00> : vector<1xf32>
    %14 = vector.multi_reduction <add>, %13, %cst_9 [1, 2] : vector<1x1x3xf32> to vector<1xf32>
    %15 = vector.shape_cast %14 : vector<1xf32> to vector<1x1x1xf32>
    %16 = vector.extract %15[0, 0, 0] : f32 from vector<1x1x1xf32>
    %cst_10 = arith.constant 6.250000e-02 : f32
    %17 = arith.mulf %cst_10, %16 : f32
    %c0_11 = arith.constant 0 : index
    %c0_12 = arith.constant 0 : index
    %18 = vector.load %arg9[%c0_11, %c0_12] : memref<8x3xi32, #tpu.memory_space<vmem>>, vector<8x3xi32>
    %c0_13 = arith.constant 0 : index
    %c0_14 = arith.constant 0 : index
    %19 = vector.load %arg10[%c0_13, %c0_14] : memref<8x3xi32, #tpu.memory_space<vmem>>, vector<8x3xi32>
    %c0_15 = arith.constant 0 : index
    %c0_16 = arith.constant 0 : index
    %c0_17 = arith.constant 0 : index
    %20 = vector.load %arg5[%c0_15, %c0_16, %c0_17] : memref<8x3x16xf32, #tpu.memory_space<vmem>>, vector<8x3x16xf32>
    %cst_18 = arith.constant dense<0xFF800000> : vector<8x3xf32>
    %21 = vector.multi_reduction <maximumf>, %20, %cst_18 [2] : vector<8x3x16xf32> to vector<8x3xf32>
    %22 = vector.shape_cast %21 : vector<8x3xf32> to vector<8x3x1xf32>
    %23 = vector.broadcast %22 : vector<8x3x1xf32> to vector<8x3x16xf32>
    %24 = arith.subf %20, %23 : vector<8x3x16xf32>
    %25 = math.exp %24 : vector<8x3x16xf32>
    %cst_19 = arith.constant dense<0.000000e+00> : vector<8x3xf32>
    %26 = vector.multi_reduction <add>, %25, %cst_19 [2] : vector<8x3x16xf32> to vector<8x3xf32>
    %27 = vector.shape_cast %26 : vector<8x3xf32> to vector<8x3x1xf32>
    %28 = math.log %27 : vector<8x3x1xf32>
    %29 = arith.addf %22, %28 : vector<8x3x1xf32>
    %30 = tpu.iota {dimensions = array<i32: 2>} : vector<8x3x16xi32>
    %31 = vector.shape_cast %18 : vector<8x3xi32> to vector<8x3x1xi32>
    %32 = vector.broadcast %31 : vector<8x3x1xi32> to vector<8x3x16xi32>
    %33 = arith.cmpi eq, %30, %32 : vector<8x3x16xi32>
    %cst_20 = arith.constant 0.000000e+00 : f32
    %34 = vector.broadcast %cst_20 : f32 to vector<8x3x16xf32>
    %35 = arith.select %33, %20, %34 : vector<8x3x16xi1>, vector<8x3x16xf32>
    %cst_21 = arith.constant dense<0.000000e+00> : vector<8x3xf32>
    %36 = vector.multi_reduction <add>, %35, %cst_21 [2] : vector<8x3x16xf32> to vector<8x3xf32>
    %37 = vector.shape_cast %36 : vector<8x3xf32> to vector<8x3x1xf32>
    %38 = arith.subf %29, %37 : vector<8x3x1xf32>
    %cst_22 = arith.constant dense<0.000000e+00> : vector<8x3xf32>
    %39 = vector.multi_reduction <add>, %38, %cst_22 [2] : vector<8x3x1xf32> to vector<8x3xf32>
    %40 = vector.broadcast %0 : vector<1x3xf32> to vector<8x3xf32>
    %41 = arith.mulf %40, %39 : vector<8x3xf32>
    %42 = vector.shape_cast %41 : vector<8x3xf32> to vector<1x8x3xf32>
    %cst_23 = arith.constant dense<0.000000e+00> : vector<1xf32>
    %43 = vector.multi_reduction <add>, %42, %cst_23 [1, 2] : vector<1x8x3xf32> to vector<1xf32>
    %44 = vector.shape_cast %43 : vector<1xf32> to vector<1x1x1xf32>
    %45 = vector.extract %44[0, 0, 0] : f32 from vector<1x1x1xf32>
    %c0_24 = arith.constant 0 : index
    %c0_25 = arith.constant 0 : index
    %c0_26 = arith.constant 0 : index
    %46 = vector.load %arg6[%c0_24, %c0_25, %c0_26] : memref<8x3x16xf32, #tpu.memory_space<vmem>>, vector<8x3x16xf32>
    %cst_27 = arith.constant dense<0xFF800000> : vector<8x3xf32>
    %47 = vector.multi_reduction <maximumf>, %46, %cst_27 [2] : vector<8x3x16xf32> to vector<8x3xf32>
    %48 = vector.shape_cast %47 : vector<8x3xf32> to vector<8x3x1xf32>
    %49 = vector.broadcast %48 : vector<8x3x1xf32> to vector<8x3x16xf32>
    %50 = arith.subf %46, %49 : vector<8x3x16xf32>
    %51 = math.exp %50 : vector<8x3x16xf32>
    %cst_28 = arith.constant dense<0.000000e+00> : vector<8x3xf32>
    %52 = vector.multi_reduction <add>, %51, %cst_28 [2] : vector<8x3x16xf32> to vector<8x3xf32>
    %53 = vector.shape_cast %52 : vector<8x3xf32> to vector<8x3x1xf32>
    %54 = math.log %53 : vector<8x3x1xf32>
    %55 = arith.addf %48, %54 : vector<8x3x1xf32>
    %56 = tpu.iota {dimensions = array<i32: 2>} : vector<8x3x16xi32>
    %57 = vector.shape_cast %19 : vector<8x3xi32> to vector<8x3x1xi32>
    %58 = vector.broadcast %57 : vector<8x3x1xi32> to vector<8x3x16xi32>
    %59 = arith.cmpi eq, %56, %58 : vector<8x3x16xi32>
    %cst_29 = arith.constant 0.000000e+00 : f32
    %60 = vector.broadcast %cst_29 : f32 to vector<8x3x16xf32>
    %61 = arith.select %59, %46, %60 : vector<8x3x16xi1>, vector<8x3x16xf32>
    %cst_30 = arith.constant dense<0.000000e+00> : vector<8x3xf32>
    %62 = vector.multi_reduction <add>, %61, %cst_30 [2] : vector<8x3x16xf32> to vector<8x3xf32>
    %63 = vector.shape_cast %62 : vector<8x3xf32> to vector<8x3x1xf32>
    %64 = arith.subf %55, %63 : vector<8x3x1xf32>
    %cst_31 = arith.constant dense<0.000000e+00> : vector<8x3xf32>
    %65 = vector.multi_reduction <add>, %64, %cst_31 [2] : vector<8x3x1xf32> to vector<8x3xf32>
    %66 = vector.broadcast %0 : vector<1x3xf32> to vector<8x3xf32>
    %67 = arith.mulf %66, %65 : vector<8x3xf32>
    %68 = vector.shape_cast %67 : vector<8x3xf32> to vector<1x8x3xf32>
    %cst_32 = arith.constant dense<0.000000e+00> : vector<1xf32>
    %69 = vector.multi_reduction <add>, %68, %cst_32 [1, 2] : vector<1x8x3xf32> to vector<1xf32>
    %70 = vector.shape_cast %69 : vector<1xf32> to vector<1x1x1xf32>
    %71 = vector.extract %70[0, 0, 0] : f32 from vector<1x1x1xf32>
    %72 = arith.addf %45, %71 : f32
    %c0_33 = arith.constant 0 : index
    %c0_34 = arith.constant 0 : index
    %c0_35 = arith.constant 0 : index
    %73 = vector.load %arg7[%c0_33, %c0_34, %c0_35] : memref<8x3x32xf32, #tpu.memory_space<vmem>>, vector<8x3x32xf32>
    %c0_36 = arith.constant 0 : index
    %c0_37 = arith.constant 0 : index
    %74 = vector.load %arg11[%c0_36, %c0_37] : memref<8x3xi32, #tpu.memory_space<vmem>>, vector<8x3xi32>
    %cst_38 = arith.constant dense<0xFF800000> : vector<8x3xf32>
    %75 = vector.multi_reduction <maximumf>, %73, %cst_38 [2] : vector<8x3x32xf32> to vector<8x3xf32>
    %76 = vector.shape_cast %75 : vector<8x3xf32> to vector<8x3x1xf32>
    %77 = vector.broadcast %76 : vector<8x3x1xf32> to vector<8x3x32xf32>
    %78 = arith.subf %73, %77 : vector<8x3x32xf32>
    %79 = math.exp %78 : vector<8x3x32xf32>
    %cst_39 = arith.constant dense<0.000000e+00> : vector<8x3xf32>
    %80 = vector.multi_reduction <add>, %79, %cst_39 [2] : vector<8x3x32xf32> to vector<8x3xf32>
    %81 = vector.shape_cast %80 : vector<8x3xf32> to vector<8x3x1xf32>
    %82 = math.log %81 : vector<8x3x1xf32>
    %83 = arith.addf %76, %82 : vector<8x3x1xf32>
    %84 = tpu.iota {dimensions = array<i32: 2>} : vector<8x3x32xi32>
    %85 = vector.shape_cast %74 : vector<8x3xi32> to vector<8x3x1xi32>
    %86 = vector.broadcast %85 : vector<8x3x1xi32> to vector<8x3x32xi32>
    %87 = arith.cmpi eq, %84, %86 : vector<8x3x32xi32>
    %cst_40 = arith.constant 0.000000e+00 : f32
    %88 = vector.broadcast %cst_40 : f32 to vector<8x3x32xf32>
    %89 = arith.select %87, %73, %88 : vector<8x3x32xi1>, vector<8x3x32xf32>
    %cst_41 = arith.constant dense<0.000000e+00> : vector<8x3xf32>
    %90 = vector.multi_reduction <add>, %89, %cst_41 [2] : vector<8x3x32xf32> to vector<8x3xf32>
    %91 = vector.shape_cast %90 : vector<8x3xf32> to vector<8x3x1xf32>
    %92 = arith.subf %83, %91 : vector<8x3x1xf32>
    %cst_42 = arith.constant dense<0.000000e+00> : vector<8x3xf32>
    %93 = vector.multi_reduction <add>, %92, %cst_42 [2] : vector<8x3x1xf32> to vector<8x3xf32>
    %94 = vector.broadcast %0 : vector<1x3xf32> to vector<8x3xf32>
    %95 = arith.mulf %94, %93 : vector<8x3xf32>
    %96 = vector.shape_cast %95 : vector<8x3xf32> to vector<1x8x3xf32>
    %cst_43 = arith.constant dense<0.000000e+00> : vector<1xf32>
    %97 = vector.multi_reduction <add>, %96, %cst_43 [1, 2] : vector<1x8x3xf32> to vector<1xf32>
    %98 = vector.shape_cast %97 : vector<1xf32> to vector<1x1x1xf32>
    %99 = vector.extract %98[0, 0, 0] : f32 from vector<1x1x1xf32>
    %c0_44 = arith.constant 0 : index
    %c0_45 = arith.constant 0 : index
    %c0_46 = arith.constant 0 : index
    %100 = vector.load %arg8[%c0_44, %c0_45, %c0_46] : memref<8x3x32xf32, #tpu.memory_space<vmem>>, vector<8x3x32xf32>
    %c0_47 = arith.constant 0 : index
    %c0_48 = arith.constant 0 : index
    %101 = vector.load %arg12[%c0_47, %c0_48] : memref<8x3xi32, #tpu.memory_space<vmem>>, vector<8x3xi32>
    %cst_49 = arith.constant dense<0xFF800000> : vector<8x3xf32>
    %102 = vector.multi_reduction <maximumf>, %100, %cst_49 [2] : vector<8x3x32xf32> to vector<8x3xf32>
    %103 = vector.shape_cast %102 : vector<8x3xf32> to vector<8x3x1xf32>
    %104 = vector.broadcast %103 : vector<8x3x1xf32> to vector<8x3x32xf32>
    %105 = arith.subf %100, %104 : vector<8x3x32xf32>
    %106 = math.exp %105 : vector<8x3x32xf32>
    %cst_50 = arith.constant dense<0.000000e+00> : vector<8x3xf32>
    %107 = vector.multi_reduction <add>, %106, %cst_50 [2] : vector<8x3x32xf32> to vector<8x3xf32>
    %108 = vector.shape_cast %107 : vector<8x3xf32> to vector<8x3x1xf32>
    %109 = math.log %108 : vector<8x3x1xf32>
    %110 = arith.addf %103, %109 : vector<8x3x1xf32>
    %111 = tpu.iota {dimensions = array<i32: 2>} : vector<8x3x32xi32>
    %112 = vector.shape_cast %101 : vector<8x3xi32> to vector<8x3x1xi32>
    %113 = vector.broadcast %112 : vector<8x3x1xi32> to vector<8x3x32xi32>
    %114 = arith.cmpi eq, %111, %113 : vector<8x3x32xi32>
    %cst_51 = arith.constant 0.000000e+00 : f32
    %115 = vector.broadcast %cst_51 : f32 to vector<8x3x32xf32>
    %116 = arith.select %114, %100, %115 : vector<8x3x32xi1>, vector<8x3x32xf32>
    %cst_52 = arith.constant dense<0.000000e+00> : vector<8x3xf32>
    %117 = vector.multi_reduction <add>, %116, %cst_52 [2] : vector<8x3x32xf32> to vector<8x3xf32>
    %118 = vector.shape_cast %117 : vector<8x3xf32> to vector<8x3x1xf32>
    %119 = arith.subf %110, %118 : vector<8x3x1xf32>
    %cst_53 = arith.constant dense<0.000000e+00> : vector<8x3xf32>
    %120 = vector.multi_reduction <add>, %119, %cst_53 [2] : vector<8x3x1xf32> to vector<8x3xf32>
    %121 = vector.broadcast %0 : vector<1x3xf32> to vector<8x3xf32>
    %122 = arith.mulf %121, %120 : vector<8x3xf32>
    %123 = vector.shape_cast %122 : vector<8x3xf32> to vector<1x8x3xf32>
    %cst_54 = arith.constant dense<0.000000e+00> : vector<1xf32>
    %124 = vector.multi_reduction <add>, %123, %cst_54 [1, 2] : vector<1x8x3xf32> to vector<1xf32>
    %125 = vector.shape_cast %124 : vector<1xf32> to vector<1x1x1xf32>
    %126 = vector.extract %125[0, 0, 0] : f32 from vector<1x1x1xf32>
    %127 = arith.addf %99, %126 : f32
    %cst_55 = arith.constant 1.000000e+00 : f32
    %128 = arith.mulf %cst_55, %72 : f32
    %cst_56 = arith.constant 2.000000e+00 : f32
    %129 = arith.mulf %cst_56, %127 : f32
    %130 = arith.addf %128, %129 : f32
    %cst_57 = arith.constant 1.250000e-01 : f32
    %131 = arith.mulf %cst_57, %130 : f32
    %c0_58 = arith.constant 0 : index
    %c0_59 = arith.constant 0 : index
    %c0_60 = arith.constant 0 : index
    %132 = vector.load %arg13[%c0_58, %c0_59, %c0_60] : memref<8x2x32xf32, #tpu.memory_space<vmem>>, vector<8x2x32xf32>
    %c0_61 = arith.constant 0 : index
    %c0_62 = arith.constant 0 : index
    %c0_63 = arith.constant 0 : index
    %133 = vector.load %arg14[%c0_61, %c0_62, %c0_63] : memref<8x2x32xf32, #tpu.memory_space<vmem>>, vector<8x2x32xf32>
    %c0_64 = arith.constant 0 : index
    %c0_65 = arith.constant 0 : index
    %c0_66 = arith.constant 0 : index
    %134 = vector.load %arg15[%c0_64, %c0_65, %c0_66] : memref<4x16x32xf32, #tpu.memory_space<vmem>>, vector<4x16x32xf32>
    %135 = vector.extract_strided_slice %132 {offsets = [0, 0, 0], sizes = [8, 1, 32], strides = [1, 1, 1]} : vector<8x2x32xf32> to vector<8x1x32xf32>
    %136 = vector.shape_cast %135 : vector<8x1x32xf32> to vector<8x32xf32>
    %137 = vector.extract_strided_slice %18 {offsets = [0, 0], sizes = [8, 1], strides = [1, 1]} : vector<8x3xi32> to vector<8x1xi32>
    %138 = vector.extract_strided_slice %134 {offsets = [0, 0, 0], sizes = [1, 16, 32], strides = [1, 1, 1]} : vector<4x16x32xf32> to vector<1x16x32xf32>
    %139 = vector.shape_cast %138 : vector<1x16x32xf32> to vector<16x32xf32>
    %140 = tpu.iota {dimensions = array<i32: 1>} : vector<8x16xi32>
    %141 = vector.broadcast %137 : vector<8x1xi32> to vector<8x16xi32>
    %142 = arith.cmpi eq, %140, %141 : vector<8x16xi32>
    %143 = arith.extui %142 : vector<8x16xi1> to vector<8x16xi32>
    %144 = arith.sitofp %143 : vector<8x16xi32> to vector<8x16xf32>
    %cst_67 = arith.constant dense<0.000000e+00> : vector<8x32xf32>
    %145 = tpu.matmul %144, %139, %cst_67 {dimension_numbers = #tpu.dot_dimension_numbers<[1], [0], [0], [1], [0, 0, 1, 1], [], []>} : vector<8x16xf32>, vector<16x32xf32>, vector<8x32xf32> -> vector<8x32xf32>
    %146 = arith.subf %136, %145 : vector<8x32xf32>
    %147 = arith.mulf %146, %146 : vector<8x32xf32>
    %cst_68 = arith.constant dense<0.000000e+00> : vector<8xf32>
    %148 = vector.multi_reduction <add>, %147, %cst_68 [1] : vector<8x32xf32> to vector<8xf32>
    %149 = vector.shape_cast %148 : vector<8xf32> to vector<8x1xf32>
    %cst_69 = arith.constant 9.99999996E-13 : f32
    %cst_70 = arith.constant 9.99999995E+11 : f32
    %150 = vector.broadcast %cst_69 : f32 to vector<8x1xf32>
    %151 = arith.maximumf %150, %149 : vector<8x1xf32>
    %152 = vector.broadcast %cst_70 : f32 to vector<8x1xf32>
    %153 = arith.minimumf %152, %151 : vector<8x1xf32>
    %154 = vector.shape_cast %153 : vector<8x1xf32> to vector<1x8x1xf32>
    %cst_71 = arith.constant dense<0.000000e+00> : vector<1xf32>
    %155 = vector.multi_reduction <add>, %154, %cst_71 [1, 2] : vector<1x8x1xf32> to vector<1xf32>
    %156 = vector.shape_cast %155 : vector<1xf32> to vector<1x1x1xf32>
    %157 = vector.extract %156[0, 0, 0] : f32 from vector<1x1x1xf32>
    %158 = vector.extract_strided_slice %132 {offsets = [0, 1, 0], sizes = [8, 1, 32], strides = [1, 1, 1]} : vector<8x2x32xf32> to vector<8x1x32xf32>
    %159 = vector.shape_cast %158 : vector<8x1x32xf32> to vector<8x32xf32>
    %160 = vector.extract_strided_slice %18 {offsets = [0, 1], sizes = [8, 1], strides = [1, 1]} : vector<8x3xi32> to vector<8x1xi32>
    %161 = vector.extract_strided_slice %134 {offsets = [1, 0, 0], sizes = [1, 16, 32], strides = [1, 1, 1]} : vector<4x16x32xf32> to vector<1x16x32xf32>
    %162 = vector.shape_cast %161 : vector<1x16x32xf32> to vector<16x32xf32>
    %163 = tpu.iota {dimensions = array<i32: 1>} : vector<8x16xi32>
    %164 = vector.broadcast %160 : vector<8x1xi32> to vector<8x16xi32>
    %165 = arith.cmpi eq, %163, %164 : vector<8x16xi32>
    %166 = arith.extui %165 : vector<8x16xi1> to vector<8x16xi32>
    %167 = arith.sitofp %166 : vector<8x16xi32> to vector<8x16xf32>
    %cst_72 = arith.constant dense<0.000000e+00> : vector<8x32xf32>
    %168 = tpu.matmul %167, %162, %cst_72 {dimension_numbers = #tpu.dot_dimension_numbers<[1], [0], [0], [1], [0, 0, 1, 1], [], []>} : vector<8x16xf32>, vector<16x32xf32>, vector<8x32xf32> -> vector<8x32xf32>
    %169 = arith.subf %159, %168 : vector<8x32xf32>
    %170 = arith.mulf %169, %169 : vector<8x32xf32>
    %cst_73 = arith.constant dense<0.000000e+00> : vector<8xf32>
    %171 = vector.multi_reduction <add>, %170, %cst_73 [1] : vector<8x32xf32> to vector<8xf32>
    %172 = vector.shape_cast %171 : vector<8xf32> to vector<8x1xf32>
    %cst_74 = arith.constant 9.99999996E-13 : f32
    %cst_75 = arith.constant 9.99999995E+11 : f32
    %173 = vector.broadcast %cst_74 : f32 to vector<8x1xf32>
    %174 = arith.maximumf %173, %172 : vector<8x1xf32>
    %175 = vector.broadcast %cst_75 : f32 to vector<8x1xf32>
    %176 = arith.minimumf %175, %174 : vector<8x1xf32>
    %177 = vector.shape_cast %176 : vector<8x1xf32> to vector<1x8x1xf32>
    %cst_76 = arith.constant dense<0.000000e+00> : vector<1xf32>
    %178 = vector.multi_reduction <add>, %177, %cst_76 [1, 2] : vector<1x8x1xf32> to vector<1xf32>
    %179 = vector.shape_cast %178 : vector<1xf32> to vector<1x1x1xf32>
    %180 = vector.extract %179[0, 0, 0] : f32 from vector<1x1x1xf32>
    %181 = arith.addf %157, %180 : f32
    %182 = vector.extract_strided_slice %133 {offsets = [0, 0, 0], sizes = [8, 1, 32], strides = [1, 1, 1]} : vector<8x2x32xf32> to vector<8x1x32xf32>
    %183 = vector.shape_cast %182 : vector<8x1x32xf32> to vector<8x32xf32>
    %184 = vector.extract_strided_slice %19 {offsets = [0, 0], sizes = [8, 1], strides = [1, 1]} : vector<8x3xi32> to vector<8x1xi32>
    %185 = vector.extract_strided_slice %134 {offsets = [2, 0, 0], sizes = [1, 16, 32], strides = [1, 1, 1]} : vector<4x16x32xf32> to vector<1x16x32xf32>
    %186 = vector.shape_cast %185 : vector<1x16x32xf32> to vector<16x32xf32>
    %187 = tpu.iota {dimensions = array<i32: 1>} : vector<8x16xi32>
    %188 = vector.broadcast %184 : vector<8x1xi32> to vector<8x16xi32>
    %189 = arith.cmpi eq, %187, %188 : vector<8x16xi32>
    %190 = arith.extui %189 : vector<8x16xi1> to vector<8x16xi32>
    %191 = arith.sitofp %190 : vector<8x16xi32> to vector<8x16xf32>
    %cst_77 = arith.constant dense<0.000000e+00> : vector<8x32xf32>
    %192 = tpu.matmul %191, %186, %cst_77 {dimension_numbers = #tpu.dot_dimension_numbers<[1], [0], [0], [1], [0, 0, 1, 1], [], []>} : vector<8x16xf32>, vector<16x32xf32>, vector<8x32xf32> -> vector<8x32xf32>
    %193 = arith.subf %183, %192 : vector<8x32xf32>
    %194 = arith.mulf %193, %193 : vector<8x32xf32>
    %cst_78 = arith.constant dense<0.000000e+00> : vector<8xf32>
    %195 = vector.multi_reduction <add>, %194, %cst_78 [1] : vector<8x32xf32> to vector<8xf32>
    %196 = vector.shape_cast %195 : vector<8xf32> to vector<8x1xf32>
    %cst_79 = arith.constant 9.99999996E-13 : f32
    %cst_80 = arith.constant 9.99999995E+11 : f32
    %197 = vector.broadcast %cst_79 : f32 to vector<8x1xf32>
    %198 = arith.maximumf %197, %196 : vector<8x1xf32>
    %199 = vector.broadcast %cst_80 : f32 to vector<8x1xf32>
    %200 = arith.minimumf %199, %198 : vector<8x1xf32>
    %201 = vector.shape_cast %200 : vector<8x1xf32> to vector<1x8x1xf32>
    %cst_81 = arith.constant dense<0.000000e+00> : vector<1xf32>
    %202 = vector.multi_reduction <add>, %201, %cst_81 [1, 2] : vector<1x8x1xf32> to vector<1xf32>
    %203 = vector.shape_cast %202 : vector<1xf32> to vector<1x1x1xf32>
    %204 = vector.extract %203[0, 0, 0] : f32 from vector<1x1x1xf32>
    %205 = arith.addf %181, %204 : f32
    %206 = vector.extract_strided_slice %133 {offsets = [0, 1, 0], sizes = [8, 1, 32], strides = [1, 1, 1]} : vector<8x2x32xf32> to vector<8x1x32xf32>
    %207 = vector.shape_cast %206 : vector<8x1x32xf32> to vector<8x32xf32>
    %208 = vector.extract_strided_slice %19 {offsets = [0, 1], sizes = [8, 1], strides = [1, 1]} : vector<8x3xi32> to vector<8x1xi32>
    %209 = vector.extract_strided_slice %134 {offsets = [3, 0, 0], sizes = [1, 16, 32], strides = [1, 1, 1]} : vector<4x16x32xf32> to vector<1x16x32xf32>
    %210 = vector.shape_cast %209 : vector<1x16x32xf32> to vector<16x32xf32>
    %211 = tpu.iota {dimensions = array<i32: 1>} : vector<8x16xi32>
    %212 = vector.broadcast %208 : vector<8x1xi32> to vector<8x16xi32>
    %213 = arith.cmpi eq, %211, %212 : vector<8x16xi32>
    %214 = arith.extui %213 : vector<8x16xi1> to vector<8x16xi32>
    %215 = arith.sitofp %214 : vector<8x16xi32> to vector<8x16xf32>
    %cst_82 = arith.constant dense<0.000000e+00> : vector<8x32xf32>
    %216 = tpu.matmul %215, %210, %cst_82 {dimension_numbers = #tpu.dot_dimension_numbers<[1], [0], [0], [1], [0, 0, 1, 1], [], []>} : vector<8x16xf32>, vector<16x32xf32>, vector<8x32xf32> -> vector<8x32xf32>
    %217 = arith.subf %207, %216 : vector<8x32xf32>
    %218 = arith.mulf %217, %217 : vector<8x32xf32>
    %cst_83 = arith.constant dense<0.000000e+00> : vector<8xf32>
    %219 = vector.multi_reduction <add>, %218, %cst_83 [1] : vector<8x32xf32> to vector<8xf32>
    %220 = vector.shape_cast %219 : vector<8xf32> to vector<8x1xf32>
    %cst_84 = arith.constant 9.99999996E-13 : f32
    %cst_85 = arith.constant 9.99999995E+11 : f32
    %221 = vector.broadcast %cst_84 : f32 to vector<8x1xf32>
    %222 = arith.maximumf %221, %220 : vector<8x1xf32>
    %223 = vector.broadcast %cst_85 : f32 to vector<8x1xf32>
    %224 = arith.minimumf %223, %222 : vector<8x1xf32>
    %225 = vector.shape_cast %224 : vector<8x1xf32> to vector<1x8x1xf32>
    %cst_86 = arith.constant dense<0.000000e+00> : vector<1xf32>
    %226 = vector.multi_reduction <add>, %225, %cst_86 [1, 2] : vector<1x8x1xf32> to vector<1xf32>
    %227 = vector.shape_cast %226 : vector<1xf32> to vector<1x1x1xf32>
    %228 = vector.extract %227[0, 0, 0] : f32 from vector<1x1x1xf32>
    %229 = arith.addf %205, %228 : f32
    %cst_87 = arith.constant 1.250000e-03 : f32
    %230 = arith.mulf %cst_87, %229 : f32
    %231 = arith.addf %17, %131 : f32
    %232 = arith.addf %231, %230 : f32
    %c0_88 = arith.constant 0 : index
    %c0_89 = arith.constant 0 : index
    %233 = memref.load %arg16[%c0_88, %c0_89] : memref<1x1xf32, #tpu.memory_space<smem>>
    memref.store %232, %arg16[%c0_88, %c0_89] : memref<1x1xf32, #tpu.memory_space<smem>>
    return
  }
}

</mosaic_0001>

<bundles_post_ra>
// kernel: pyr_mse_loss_lrc.1
= control target key start
LH: loop header
LB: loop body
LE: loop exit
PB: predicated region body
PF: predicated region fallthrough
CT: control target
= control target key end

     0   :  { %s2786_s0 = inlined_call_operand.vmem [shape: f32[1,3], index: 0, kind: input, shape index: {}]   ;;  %s2787_s1 = inlined_call_operand.vmem [shape: f32[8,3], index: 1, kind: input, shape index: {}]   ;;  %s2788_s2 = inlined_call_operand.vmem [shape: f32[8,3], index: 2, kind: input, shape index: {}]   ;;  %s2789_s3 = inlined_call_operand.vmem [shape: f32[8,3], index: 3, kind: input, shape index: {}]   ;;  %s2790_s4 = inlined_call_operand.vmem [shape: f32[8,3], index: 4, kind: input, shape index: {}]   ;;  %s2791_s5 = inlined_call_operand.vmem [shape: f32[8,3,16], index: 5, kind: input, shape index: {}]   ;;  %s2792_s6 = inlined_call_operand.vmem [shape: f32[8,3,16], index: 6, kind: input, shape index: {}]   ;;  %s2793_s7 = inlined_call_operand.vmem [shape: f32[8,3,32], index: 7, kind: input, shape index: {}]   ;;  %s2794_s8 = inlined_call_operand.vmem [shape: f32[8,3,32], index: 8, kind: input, shape index: {}]   ;;  %s2795_s9 = inlined_call_operand.vmem [shape: s32[8,3], index: 9, kind: input, shape index: {}]   ;;  %s2796_s10 = inlined_call_operand.vmem [shape: s32[8,3], index: 10, kind: input, shape index: {}]   ;;  %s2797_s11 = inlined_call_operand.vmem [shape: s32[8,3], index: 11, kind: input, shape index: {}]   ;;  %s2798_s12 = inlined_call_operand.vmem [shape: s32[8,3], index: 12, kind: input, shape index: {}]   ;;  %s2799_s13 = inlined_call_operand.vmem [shape: f32[8,2,32], index: 13, kind: input, shape index: {}]   ;;  %s2800_s14 = inlined_call_operand.vmem [shape: f32[8,2,32], index: 14, kind: input, shape index: {}]   ;;  %s2801_s15 = inlined_call_operand.vmem [shape: f32[4,16,32], index: 15, kind: input, shape index: {}]   ;;  %s2802_s16 = inlined_call_operand.hbm [shape: f32[1,1], index: 16, kind: output, shape index: {}]  }
   0x1   :  { %2804 = sst [smem:[#allocation5_spill]] %s2786_s0 }
   0x2   :  { %v1860_v0 = vld [vmem:[%s2791_s5 + $0xc] sm:$0x7]  ;;  %vm95_vm0 = vcmask 124928   ;;  %v1865_v1 = vld [vmem:[%s2791_s5 + $0x4] sm:$0x7]  ;;  %v192_v5 = vlaneseq }
   0x3   :  { %v105_v2 = vsel %vm95_vm0, %v1860_v0, -inf  ;;  %v99_v3 = vsel %vm95_vm0, %v1865_v1, -inf  ;;  %v1874_v4 = vld [vmem:[%s2791_s5] sm:$0x7]  ;;  %v1884_v8 = vld [vmem:[%s2791_s5 + $0x10] sm:$0x7] }
   0x4   :  { %106 = vmax.xlane.f32.xlu2 %v105_v2  ;;  %100 = vmax.xlane.f32.xlu1 %v99_v3  ;;  %v96_v6 = vsel %vm95_vm0, %v1874_v4, -inf  ;;  %v55_v7 = vld [vmem:[%s2787_s1] sm:$0xff]  ;;  %v1889_v9 = vld [vmem:[%s2791_s5 + $0x8] sm:$0x7]  ;;  %v1900_v12 = vld [vmem:[%s2791_s5 + $0x14] sm:$0x7] }
   0x5   :  { %97 = vmax.xlane.f32.xlu0 %v96_v6  ;;  %v56_v10 = vld [vmem:[%s2788_s2] sm:$0xff]  ;;  %v1906_v15 = vshrl.u32 %v192_v5, 7 }
   0x6   :  { %v58_v11 = vld [vmem:[%s2789_s3] sm:$0xff]  ;;  %v57_v13 = vsub.f32 %v55_v7, %v56_v10 }
   0x7   :  { %v59_v14 = vld [vmem:[%s2790_s4] sm:$0xff] }
   0x8   :  { %v60_v16 = vsub.f32 %v58_v11, %v59_v14 }
   0x9   :  { %21 = vsyncpa [#allocation3], 0  ;;  %v108_v17 = vsel %vm95_vm0, %v1884_v8, -inf  ;;  %v102_v18 = vsel %vm95_vm0, %v1889_v9, -inf  ;;  %v61_v19 = vmul.f32 %v57_v13, %v57_v13  ;;  %1613 = vset.pattern.permute.xlu2 %v1906_v15  ;;  %1615 = vset.pattern.permute.xlu1 %v1906_v15  ;;  %v111_v20 = vsel %vm95_vm0, %v1900_v12, -inf  ;;  %s2805_s28 = sld [smem:[#allocation5_spill]] }
   0xa   :  { %v62_v21 = vmul.f32 %v60_v16, %v60_v16  ;;  %1614 = vset.pattern.permute.xlu0 %v1906_v15  ;;  %vm64_vm1 = vcmask 23552   ;;  %v1920_v23 = vld [vmem:[%s2791_s5 + $0x1c] sm:$0x7]  ;;  %v1925_v24 = vld [vmem:[%s2791_s5 + $0x18] sm:$0x7]  ;;  %vm73_vm2 = vcmask 16384  }
   0xb   :  { %v117_v27 = vsel %vm95_vm0, %v1920_v23, -inf  ;;  %v114_v28 = vsel %vm95_vm0, %v1925_v24, -inf  ;;  %v1938_v37 = vld [vmem:[%s2795_s9] sm:$0xff]  ;;  %vm325_vm11 = vcmask 1041409   ;;  %vm327_vm12 = vcmask 1042434   ;;  %s1573_s0 = sshll.u32 %s2802_s16, 4  ;;  %s1574_s0 = int_to_ptr.hbm [resolvable:$true] %s1573_s0 }
   0xc   :  { %109 = vmax.xlane.f32.xlu2 %v108_v17  ;;  %103 = vmax.xlane.f32.xlu1 %v102_v18  ;;  %v63_v22 = vadd.f32 %v62_v21, %v61_v19  ;;  %v194_v38 = vperm.slane %v1938_v37, 0  ;;  %v208_v39 = vperm.slane %v1938_v37, 2  ;;  %v201_v40 = vperm.slane %v1938_v37, 1 }
   0xd   :  { %112 = vmax.xlane.f32.xlu0 %v111_v20  ;;  %v215_v41 = vperm.slane %v1938_v37, 3  ;;  %v229_v42 = vperm.slane %v1938_v37, 5  ;;  %v222_v43 = vperm.slane %v1938_v37, 4  ;;  %v243_v44 = vperm.slane %v1938_v37, 7 }
   0xe   :  { %v65_v25 = vsel %vm64_vm1, %v63_v22, 0.0  ;;  %v236_v45 = vperm.slane %v1938_v37, 6  ;;  %vm329_vm13 = vcmask 1043459   ;;  %vm331_vm14 = vcmask 1044484  }
   0xf   :  { %v66_v26 = vrot.slane %v65_v25, 4  ;;  %v54_v33 = vld [vmem:[%s2805_s28] sm:$0x1]  ;;  %vm333_vm15 = vcmask 1045509  }
  0x11   :  { %v67_v29 = vadd.f32 %v66_v26, %v65_v25 }
  0x13   :  { %v68_v30 = vrot.slane %v67_v29, 2 }
  0x14   :  { %118 = vmax.xlane.f32.xlu2 %v117_v27  ;;  %115 = vmax.xlane.f32.xlu1 %v114_v28  ;;  %v1986_v28 = vand.u32 127, %v192_v5 }
  0x15   :  { %v69_v31 = vadd.f32 %v68_v30, %v67_v29 }
  0x17   :  { %v70_v32 = vrot.slane %v69_v31, 1 }
  0x19   :  { %v71_v34 = vadd.f32 %v70_v32, %v69_v31 }
  0x1b   :  { %v72_v35 = vmul.f32 %v71_v34, %v54_v33 }
  0x1d   :  { %v74_v36 = vsel %vm73_vm2, %v72_v35, 0.0  ;;  %vm335_vm2 = vcmask 1046534  }
  0x1e   :  { %75 = vadd.xlane.f32.xlu0 %v74_v36 }
  0x2c   :  { %199 = vperm.xlu2 %1613, %v194_v38  }
  0x2d   :  { %213 = vperm.xlu1 %1615, %v208_v39  }
  0x32   :  { %206 = vperm.xlu0 %1614, %v201_v40  }
  0x34   :  { %220 = vperm.xlu2 %1613, %v215_v41  }
  0x35   :  { %234 = vperm.xlu1 %1615, %v229_v42  }
  0x3c   :  { %227 = vperm.xlu2 %1613, %v222_v43  }
  0x3d   :  { %248 = vperm.xlu1 %1615, %v243_v44  }
  0x44   :  { %241 = vperm.xlu2 %1613, %v236_v45  }
  0x77   :  { %v1948_v46 = vpop.xlane.xlu2 %106  ;;  %v1950_v47 = vpop.xlane.xlu1 %100 }
  0x78   :  { %v121_v48 = vsub.f32 %v1865_v1, %v1950_v47  ;;  %v1954_v49 = vpop.xlane.xlu0 %97  ;;  %v123_v51 = vsub.f32 %v1860_v0, %v1948_v46 }
  0x79   :  { %v120_v50 = vsub.f32 %v1874_v4, %v1954_v49 }
  0x7a   :  { %v130_v52 = vmul.f32 1.442695, %v121_v48  ;;  %v134_v54 = vmul.f32 1.442695, %v123_v51 }
  0x7b   :  { %v128_v53 = vmul.f32 1.442695, %v120_v50 }
  0x7c   :  { %1624 = vpow2.f32 %v130_v52 }
  0x7d   :  { %1626 = vpow2.f32 %v128_v53 }
  0x7e   :  { %1628 = vpow2.f32 %v134_v54 }
  0x7f   :  { %v1960_v55 = vpop.xlane.xlu2 %109  ;;  %v1962_v56 = vpop.xlane.xlu1 %103 }
  0x80   :  { %v124_v57 = vsub.f32 %v1884_v8, %v1960_v55  ;;  %v122_v58 = vsub.f32 %v1889_v9, %v1962_v56  ;;  %v1968_v59 = vpop.xlane.xlu0 %112 }
  0x81   :  { %v125_v63 = vsub.f32 %v1900_v12, %v1968_v59 }
  0x82   :  { %v136_v60 = vmul.f32 1.442695, %v124_v57  ;;  %v132_v61 = vmul.f32 1.442695, %v122_v58  ;;  %v1625_v62 = vpop.eup %1624 }
  0x83   :  { %v1627_v2 = vpop.eup %1626  ;;  %v147_v3 = vsel %vm95_vm0, %v1625_v62, 0.0  ;;  %v138_v7 = vmul.f32 1.442695, %v125_v63 }
  0x84   :  { %1630 = vpow2.f32 %v136_v60  ;;  %148 = vadd.xlane.f32.xlu1 %v147_v3  ;;  %v144_v6 = vsel %vm95_vm0, %v1627_v2, 0.0  ;;  %v1629_v13 = vpop.eup %1628  ;;  %v2024_v3 = vld [vmem:[%s2792_s6 + $0x14] sm:$0x7] }
  0x85   :  { %1632 = vpow2.f32 %v132_v61  ;;  %145 = vadd.xlane.f32.xlu0 %v144_v6  ;;  %v153_v22 = vsel %vm95_vm0, %v1629_v13, 0.0  ;;  %v2029_v6 = vld [vmem:[%s2792_s6 + $0x4] sm:$0x7] }
  0x86   :  { %1634 = vpow2.f32 %v138_v7  ;;  %v362_v13 = vsel %vm95_vm0, %v2029_v6, -inf }
  0x87   :  { %v1974_v10 = vpop.xlane.xlu2 %118  ;;  %v1976_v11 = vpop.xlane.xlu1 %115 }
  0x88   :  { %v127_v14 = vsub.f32 %v1920_v23, %v1974_v10  ;;  %v126_v16 = vsub.f32 %v1925_v24, %v1976_v11 }
  0x8a   :  { %v1631_v17 = vpop.eup %1630  ;;  %v142_v18 = vmul.f32 1.442695, %v127_v14  ;;  %v140_v19 = vmul.f32 1.442695, %v126_v16  ;;  %v2046_v16 = vld [vmem:[%s2792_s6 + $0x10] sm:$0x7] }
  0x8b   :  { %v1633_v20 = vpop.eup %1632  ;;  %v156_v21 = vsel %vm95_vm0, %v1631_v17, 0.0  ;;  %v371_v17 = vsel %vm95_vm0, %v2046_v16, -inf }
  0x8c   :  { %1636 = vpow2.f32 %v142_v18  ;;  %v150_v25 = vsel %vm95_vm0, %v1633_v20, 0.0  ;;  %157 = vadd.xlane.f32.xlu1 %v156_v21  ;;  %v1635_v27 = vpop.eup %1634  ;;  %v2053_v18 = vld [vmem:[%s2792_s6 + $0xc] sm:$0x7]  ;;  %v2060_v20 = vld [vmem:[%s2792_s6 + $0x1c] sm:$0x7] }
  0x8d   :  { %1638 = vpow2.f32 %v140_v19  ;;  %151 = vadd.xlane.f32.xlu2 %v150_v25  ;;  %154 = vadd.xlane.f32.xlu0 %v153_v22  ;;  %v159_v35 = vsel %vm95_vm0, %v1635_v27, 0.0  ;;  %v368_v19 = vsel %vm95_vm0, %v2053_v18, -inf  ;;  %v380_v21 = vsel %vm95_vm0, %v2060_v20, -inf  ;;  %v2067_v22 = vld [vmem:[%s2792_s6 + $0x18] sm:$0x7] }
  0x8e   :  { %v377_v25 = vsel %vm95_vm0, %v2067_v22, -inf }
  0x8f   :  { %v200_v26 = vpop.permute.xlu2 %199 }
  0x90   :  { %vm250_vm3 = vcmp.eq.s32.totalorder %v1986_v28, %v200_v26 }
  0x91   :  { %v76_v29 = vpop.xlane.xlu0 %75  ;;  %v258_v40 = vsel %vm250_vm3, %v1874_v4, 0.0  ;;  %vm337_vm3 = vcmask 1047559  }
  0x92   :  { %v1637_v30 = vpop.eup %1636  ;;  %v77_v31 = vrot.slane %v76_v29, 4  ;;  %v266_v42 = vsel %vm95_vm0, %v258_v40, 0.0 }
  0x93   :  { %v1639_v32 = vpop.eup %1638  ;;  %v165_v33 = vsel %vm95_vm0, %v1637_v30, 0.0 }
  0x94   :  { %v78_v34 = vadd.f32 %v77_v31, %v76_v29  ;;  %v162_v36 = vsel %vm95_vm0, %v1639_v32, 0.0  ;;  %166 = vadd.xlane.f32.xlu1 %v165_v33 }
  0x95   :  { %160 = vadd.xlane.f32.xlu2 %v159_v35  ;;  %163 = vadd.xlane.f32.xlu0 %v162_v36 }
  0x96   :  { %v79_v38 = vrot.slane %v78_v34, 2 }
  0x97   :  { %v221_v39 = vpop.permute.xlu2 %220 }
  0x98   :  { %v80_v5 = vadd.f32 %v79_v38, %v78_v34  ;;  %vm253_vm8 = vcmp.eq.s32.totalorder %v1986_v28, %v221_v39 }
  0x99   :  { %v261_v58 = vsel %vm253_vm8, %v1860_v0, 0.0 }
  0x9a   :  { %v81_v41 = vrot.slane %v80_v5, 1  ;;  %v275_v61 = vsel %vm95_vm0, %v261_v58, 0.0 }
  0x9c   :  { %v82_v43 = vadd.f32 %v81_v41, %v80_v5 }
  0x9d   :  { %267 = vadd.xlane.f32.xlu0 %v266_v42 }
  0x9e   :  { %1591 = vpush %v82_v43 }
  0x9f   :  { %v214_v44 = vpop.permute.xlu1 %213  ;;  %v228_v45 = vpop.permute.xlu2 %227 }
  0xa0   :  { %vm252_vm4 = vcmp.eq.s32.totalorder %v1986_v28, %v214_v44  ;;  %vm254_vm5 = vcmp.eq.s32.totalorder %v1986_v28, %v228_v45 }
  0xa1   :  { %v260_v48 = vsel %vm252_vm4, %v1889_v9, 0.0  ;;  %v262_v50 = vsel %vm254_vm5, %v1884_v8, 0.0 }
  0xa2   :  { %v272_v51 = vsel %vm95_vm0, %v260_v48, 0.0  ;;  %v278_v4 = vsel %vm95_vm0, %v262_v50, 0.0 }
  0xa3   :  { %273 = vadd.xlane.f32.xlu1 %v272_v51 }
  0xa4   :  { %v207_v52 = vpop.permute.xlu0 %206 }
  0xa5   :  { %vm251_vm6 = vcmp.eq.s32.totalorder %v1986_v28, %v207_v52  ;;  %279 = vadd.xlane.f32.xlu0 %v278_v4 }
  0xa6   :  { %v259_v53 = vsel %vm251_vm6, %v1865_v1, 0.0  ;;  %v2011_v1 = vld [vmem:[%s2792_s6 + $0x8] sm:$0x7] }
  0xa7   :  { %v269_v54 = vsel %vm95_vm0, %v259_v53, 0.0  ;;  %v235_v57 = vpop.permute.xlu1 %234  ;;  %v242_v60 = vpop.permute.xlu2 %241 }
  0xa8   :  { %270 = vadd.xlane.f32.xlu2 %v269_v54  ;;  %vm255_vm7 = vcmp.eq.s32.totalorder %v1986_v28, %v235_v57  ;;  %vm256_vm10 = vcmp.eq.s32.totalorder %v1986_v28, %v242_v60 }
  0xa9   :  { %v263_v8 = vsel %vm255_vm7, %v1900_v12, 0.0  ;;  %v365_v12 = vsel %vm95_vm0, %v2011_v1, -inf  ;;  %v264_v2 = vsel %vm256_vm10, %v1925_v24, 0.0  ;;  %v2039_v24 = vld [vmem:[%s2792_s6] sm:$0x7]  ;;  %vm612_vm10 = vcmask 256000  }
  0xaa   :  { %v281_v9 = vsel %vm95_vm0, %v263_v8, 0.0  ;;  %v284_v7 = vsel %vm95_vm0, %v264_v2, 0.0  ;;  %v359_v14 = vsel %vm95_vm0, %v2039_v24, -inf }
  0xab   :  { %282 = vadd.xlane.f32.xlu1 %v281_v9 }
  0xaf   :  { %v249_v62 = vpop.permute.xlu1 %248 }
  0xb0   :  { %276 = vadd.xlane.f32.xlu2 %v275_v61  ;;  %vm257_vm9 = vcmp.eq.s32.totalorder %v1986_v28, %v249_v62 }
  0xb1   :  { %v265_v63 = vsel %vm257_vm9, %v1920_v23, 0.0  ;;  %v374_v23 = vsel %vm95_vm0, %v2024_v3, -inf }
  0xb2   :  { %v287_v0 = vsel %vm95_vm0, %v265_v63, 0.0 }
  0xb3   :  { %366 = vmax.xlane.f32.xlu1 %v365_v12  ;;  %288 = vadd.xlane.f32.xlu0 %v287_v0 }
  0xb8   :  { %285 = vadd.xlane.f32.xlu2 %v284_v7 }
  0xbb   :  { %375 = vmax.xlane.f32.xlu1 %v374_v23  ;;  %363 = vmax.xlane.f32.xlu0 %v362_v13 }
  0xc0   :  { %360 = vmax.xlane.f32.xlu2 %v359_v14 }
  0xc3   :  { %372 = vmax.xlane.f32.xlu0 %v371_v17 }
  0xc8   :  { %369 = vmax.xlane.f32.xlu2 %v368_v19 }
  0xcb   :  { %381 = vmax.xlane.f32.xlu0 %v380_v21 }
  0xd0   :  { %378 = vmax.xlane.f32.xlu2 %v377_v25 }
  0xf7   :  { %v149_v27 = vpop.xlane.xlu1 %148 }
  0xf8   :  { %v146_v26 = vpop.xlane.xlu0 %145 }
  0xf9   :  { %1640 = vlog2.f32 %v146_v26 }
  0xff   :  { %v158_v31 = vpop.xlane.xlu1 %157  ;;  %v1641_v32 = vpop.eup %1640 }
 0x100   :  { %v155_v29 = vpop.xlane.xlu0 %154  ;;  %v152_v30 = vpop.xlane.xlu2 %151  ;;  %v169_v34 = vmul.f32 0.6931472, %v1641_v32 }
 0x101   :  { %1642 = vlog2.f32 %v152_v30 }
 0x102   :  { %1644 = vlog2.f32 %v158_v31  ;;  %v184_v39 = vadd.f32 %v169_v34, %v1954_v49 }
 0x103   :  { %1646 = vlog2.f32 %v149_v27 }
 0x107   :  { %v1643_v36 = vpop.eup %1642  ;;  %v167_v38 = vpop.xlane.xlu1 %166 }
 0x108   :  { %v164_v33 = vpop.xlane.xlu0 %163  ;;  %v161_v35 = vpop.xlane.xlu2 %160  ;;  %v173_v40 = vmul.f32 0.6931472, %v1643_v36 }
 0x109   :  { %1648 = vlog2.f32 %v161_v35  ;;  %v1645_v5 = vpop.eup %1644 }
 0x10a   :  { %v1647_v43 = vpop.eup %1646  ;;  %v177_v44 = vmul.f32 0.6931472, %v1645_v5  ;;  %1650 = vlog2.f32 %v155_v29  ;;  %v186_v45 = vadd.f32 %v173_v40, %v1962_v56 }
 0x10b   :  { %v171_v50 = vmul.f32 0.6931472, %v1647_v43  ;;  %1652 = vlog2.f32 %v167_v38 }
 0x10c   :  { %v188_v52 = vadd.f32 %v177_v44, %v1960_v55  ;;  %1654 = vlog2.f32 %v164_v33 }
 0x10d   :  { %v185_v49 = vadd.f32 %v171_v50, %v1950_v47 }
 0x10f   :  { %v1649_v48 = vpop.eup %1648 }
 0x110   :  { %v268_v41 = vpop.xlane.xlu0 %267  ;;  %v179_v53 = vmul.f32 0.6931472, %v1649_v48  ;;  %v1651_v8 = vpop.eup %1650 }
 0x111   :  { %v290_v42 = vsub.f32 %v184_v39, %v268_v41  ;;  %v1653_v61 = vpop.eup %1652  ;;  %v175_v62 = vmul.f32 0.6931472, %v1651_v8 }
 0x112   :  { %v189_v56 = vadd.f32 %v179_v53, %v1968_v59  ;;  %v183_v2 = vmul.f32 0.6931472, %v1653_v61  ;;  %v1655_v13 = vpop.eup %1654 }
 0x113   :  { %v317_v12 = vperm.slane %v290_v42, %v1986_v28  ;;  %v187_v23 = vadd.f32 %v175_v62, %v1948_v46  ;;  %v181_v19 = vmul.f32 0.6931472, %v1655_v13 }
 0x114   :  { %v191_v59 = vadd.f32 %v183_v2, %v1974_v10 }
 0x115   :  { %v190_v33 = vadd.f32 %v181_v19, %v1976_v11 }
 0x116   :  { %v274_v51 = vpop.xlane.xlu1 %273 }
 0x117   :  { %v292_v4 = vsub.f32 %v186_v45, %v274_v51 }
 0x118   :  { %v280_v54 = vpop.xlane.xlu0 %279 }
 0x119   :  { %v294_v57 = vsub.f32 %v188_v52, %v280_v54  ;;  %v319_v60 = vperm.slane %v292_v4, %v1986_v28 }
 0x11b   :  { %v271_v9 = vpop.xlane.xlu2 %270  ;;  %v321_v27 = vperm.slane %v294_v57, %v1986_v28 }
 0x11c   :  { %v291_v58 = vsub.f32 %v185_v49, %v271_v9 }
 0x11e   :  { %v318_v55 = vperm.slane %v291_v58, %v1986_v28  ;;  %v283_v63 = vpop.xlane.xlu1 %282 }
 0x11f   :  { %v295_v0 = vsub.f32 %v189_v56, %v283_v63 }
 0x120   :  { %v326_v47 = vsel %vm325_vm11, %v318_v55, %v317_v12 }
 0x121   :  { %v328_v7 = vsel %vm327_vm12, %v319_v60, %v326_v47  ;;  %v322_v46 = vperm.slane %v295_v0, %v1986_v28 }
 0x123   :  { %v277_v14 = vpop.xlane.xlu2 %276 }
 0x124   :  { %v293_v17 = vsub.f32 %v187_v23, %v277_v14 }
 0x126   :  { %v320_v21 = vperm.slane %v293_v17, %v1986_v28  ;;  %v2084_v25 = vpop.xlane.xlu1 %366  ;;  %v289_v26 = vpop.xlane.xlu0 %288 }
 0x127   :  { %v385_v29 = vsub.f32 %v2011_v1, %v2084_v25  ;;  %v297_v30 = vsub.f32 %v191_v59, %v289_v26  ;;  %v2137_v59 = vld [vmem:[%s2796_s10] sm:$0xff] }
 0x128   :  { %v330_v31 = vsel %vm329_vm13, %v320_v21, %v328_v7  ;;  %v455_v26 = vperm.slane %v2137_v59, 0 }
 0x129   :  { %v332_v10 = vsel %vm331_vm14, %v321_v27, %v330_v31  ;;  %v395_v32 = vmul.f32 1.442695, %v385_v29  ;;  %v324_v39 = vperm.slane %v297_v30, %v1986_v28  ;;  %v476_v30 = vperm.slane %v2137_v59, 3 }
 0x12a   :  { %v334_v34 = vsel %vm333_vm15, %v322_v46, %v332_v10  ;;  %v490_v46 = vperm.slane %v2137_v59, 5  ;;  %v469_v31 = vperm.slane %v2137_v59, 2  ;;  %v462_v10 = vperm.slane %v2137_v59, 1 }
 0x12b   :  { %1656 = vpow2.f32 %v395_v32  ;;  %v286_v35 = vpop.xlane.xlu2 %285  ;;  %v497_v32 = vperm.slane %v2137_v59, 6 }
 0x12c   :  { %v296_v36 = vsub.f32 %v190_v33, %v286_v35  ;;  %v483_v33 = vperm.slane %v2137_v59, 4 }
 0x12e   :  { %v323_v38 = vperm.slane %v296_v36, %v1986_v28  ;;  %v2096_v5 = vpop.xlane.xlu1 %375  ;;  %v2098_v40 = vpop.xlane.xlu0 %363 }
 0x12f   :  { %v388_v41 = vsub.f32 %v2024_v3, %v2096_v5  ;;  %v384_v11 = vsub.f32 %v2029_v6, %v2098_v40 }
 0x130   :  { %v336_v42 = vsel %vm335_vm2, %v323_v38, %v334_v34  ;;  %v504_v34 = vperm.slane %v2137_v59, 7 }
 0x131   :  { %v1657_v43 = vpop.eup %1656  ;;  %v401_v44 = vmul.f32 1.442695, %v388_v41  ;;  %v393_v45 = vmul.f32 1.442695, %v384_v11  ;;  %v2107_v50 = vsel %vm337_vm3, %v324_v39, %v336_v42 }
 0x132   :  { %v413_v48 = vsel %vm95_vm0, %v1657_v43, 0.0 }
 0x133   :  { %1658 = vpow2.f32 %v401_v44  ;;  %v2109_v51 = vpop.xlane.xlu2 %360  ;;  %414 = vadd.xlane.f32.xlu0 %v413_v48 }
 0x134   :  { %v383_v4 = vsub.f32 %v2039_v24, %v2109_v51  ;;  %1660 = vpow2.f32 %v393_v45 }
 0x136   :  { %v391_v52 = vmul.f32 1.442695, %v383_v4  ;;  %v2113_v53 = vpop.xlane.xlu0 %372 }
 0x137   :  { %v387_v54 = vsub.f32 %v2046_v16, %v2113_v53 }
 0x138   :  { %1662 = vpow2.f32 %v391_v52 }
 0x139   :  { %v1659_v49 = vpop.eup %1658  ;;  %v399_v57 = vmul.f32 1.442695, %v387_v54 }
 0x13a   :  { %v1661_v8 = vpop.eup %1660  ;;  %v422_v9 = vsel %vm95_vm0, %v1659_v49, 0.0 }
 0x13b   :  { %v2118_v58 = vpop.xlane.xlu2 %369  ;;  %1664 = vpow2.f32 %v399_v57  ;;  %423 = vadd.xlane.f32.xlu0 %v422_v9  ;;  %v410_v60 = vsel %vm95_vm0, %v1661_v8, 0.0 }
 0x13c   :  { %v386_v56 = vsub.f32 %v2053_v18, %v2118_v58  ;;  %411 = vadd.xlane.f32.xlu2 %v410_v60 }
 0x13e   :  { %v1663_v61 = vpop.eup %1662  ;;  %v397_v62 = vmul.f32 1.442695, %v386_v56  ;;  %v2123_v12 = vpop.xlane.xlu0 %381  ;;  %v2177_v56 = vld [vmem:[%s2805_s28] ss:$0 sm:$0xff] }
 0x13f   :  { %v407_v55 = vsel %vm95_vm0, %v1663_v61, 0.0  ;;  %v390_v63 = vsub.f32 %v2060_v20, %v2123_v12 }
 0x140   :  { %1666 = vpow2.f32 %v397_v62  ;;  %408 = vadd.xlane.f32.xlu1 %v407_v55  ;;  %v340_v62 = vmul.f32 %v2177_v56, %v2107_v50 }
 0x141   :  { %v1665_v0 = vpop.eup %1664  ;;  %v405_v47 = vmul.f32 1.442695, %v390_v63 }
 0x142   :  { %v419_v2 = vsel %vm95_vm0, %v1665_v0, 0.0  ;;  %v341_v55 = vsel %vm64_vm1, %v340_v62, 0.0  ;;  %v2190_v0 = vld [vmem:[%s2793_s7] sm:$0x7] }
 0x143   :  { %v2129_v7 = vpop.xlane.xlu2 %378  ;;  %1668 = vpow2.f32 %v405_v47  ;;  %v613_v50 = vsel %vm612_vm10, %v2190_v0, -inf }
 0x144   :  { %v389_v23 = vsub.f32 %v2067_v22, %v2129_v7  ;;  %420 = vadd.xlane.f32.xlu2 %v419_v2 }
 0x146   :  { %v1667_v13 = vpop.eup %1666  ;;  %v403_v14 = vmul.f32 1.442695, %v389_v23  ;;  %v2200_v23 = vld [vmem:[%s2793_s7 + $0xc] sm:$0x7] }
 0x147   :  { %v416_v17 = vsel %vm95_vm0, %v1667_v13, 0.0  ;;  %v622_v13 = vsel %vm612_vm10, %v2200_v23, -inf }
 0x148   :  { %1670 = vpow2.f32 %v403_v14  ;;  %417 = vadd.xlane.f32.xlu1 %v416_v17  ;;  %v2207_v17 = vld [vmem:[%s2793_s7 + $0x18] sm:$0x7] }
 0x149   :  { %v1669_v19 = vpop.eup %1668 }
 0x14a   :  { %v428_v21 = vsel %vm95_vm0, %v1669_v19, 0.0 }
 0x14c   :  { %429 = vadd.xlane.f32.xlu2 %v428_v21  ;;  %v631_v21 = vsel %vm612_vm10, %v2207_v17, -inf }
 0x14e   :  { %v1671_v27 = vpop.eup %1670 }
 0x14f   :  { %v425_v29 = vsel %vm95_vm0, %v1671_v27, 0.0  ;;  %460 = vperm.xlu0 %1614, %v455_v26   ;;  %v2217_v26 = vld [vmem:[%s2793_s7 + $0x4] sm:$0x7] }
 0x150   :  { %426 = vadd.xlane.f32.xlu1 %v425_v29  ;;  %v616_v27 = vsel %vm612_vm10, %v2217_v26, -inf }
 0x157   :  { %481 = vperm.xlu0 %1614, %v476_v30   ;;  %v2231_v30 = vld [vmem:[%s2793_s7 + $0x1c] sm:$0x7] }
 0x15f   :  { %495 = vperm.xlu0 %1614, %v490_v46   ;;  %v634_v46 = vsel %vm612_vm10, %v2231_v30, -inf }
 0x164   :  { %474 = vperm.xlu2 %1613, %v469_v31  }
 0x169   :  { %467 = vperm.xlu1 %1615, %v462_v10  }
 0x16c   :  { %502 = vperm.xlu2 %1613, %v497_v32  }
 0x171   :  { %488 = vperm.xlu1 %1615, %v483_v33  }
 0x179   :  { %509 = vperm.xlu1 %1615, %v504_v34  }
 0x1a6   :  { %v2149_v35 = vpop.xlane.xlu0 %414 }
 0x1a7   :  { %1672 = vlog2.f32 %v2149_v35 }
 0x1ad   :  { %v1673_v32 = vpop.eup %1672 }
 0x1ae   :  { %v2155_v39 = vpop.xlane.xlu0 %423 }
 0x1af   :  { %v2151_v36 = vpop.xlane.xlu2 %411 }
 0x1b3   :  { %v2157_v41 = vpop.xlane.xlu1 %408 }
 0x1b4   :  { %1674 = vlog2.f32 %v2157_v41 }
 0x1b5   :  { %1676 = vlog2.f32 %v2151_v36 }
 0x1b7   :  { %v2153_v38 = vpop.xlane.xlu2 %420 }
 0x1ba   :  { %v1675_v33 = vpop.eup %1674 }
 0x1bb   :  { %v418_v48 = vpop.xlane.xlu1 %417 }
 0x1bc   :  { %1678 = vlog2.f32 %v418_v48 }
 0x1bd   :  { %1680 = vlog2.f32 %v2155_v39 }
 0x1be   :  { %1682 = vlog2.f32 %v2153_v38 }
 0x1bf   :  { %v2159_v11 = vpop.xlane.xlu2 %429 }
 0x1c1   :  { %v461_v42 = vpop.permute.xlu0 %460 }
 0x1c2   :  { %vm511_vm4 = vcmp.eq.s32.totalorder %v1986_v28, %v461_v42  ;;  %v1677_v42 = vpop.eup %1676 }
 0x1c3   :  { %v519_v43 = vsel %vm511_vm4, %v2039_v24, 0.0  ;;  %v427_v60 = vpop.xlane.xlu1 %426 }
 0x1c4   :  { %v527_v44 = vsel %vm95_vm0, %v519_v43, 0.0  ;;  %v1679_v43 = vpop.eup %1678  ;;  %1684 = vlog2.f32 %v427_v60 }
 0x1c5   :  { %528 = vadd.xlane.f32.xlu0 %v527_v44  ;;  %v432_v44 = vmul.f32 0.6931472, %v1675_v33  ;;  %v438_v35 = vmul.f32 0.6931472, %v1679_v43  ;;  %v1681_v36 = vpop.eup %1680  ;;  %1686 = vlog2.f32 %v2159_v11 }
 0x1c6   :  { %v442_v62 = vmul.f32 0.6931472, %v1681_v36 }
 0x1c7   :  { %v475_v45 = vpop.permute.xlu2 %474  ;;  %v447_v41 = vadd.f32 %v432_v44, %v2109_v51 }
 0x1c8   :  { %vm513_vm5 = vcmp.eq.s32.totalorder %v1986_v28, %v475_v45  ;;  %v436_v45 = vmul.f32 0.6931472, %v1673_v32 }
 0x1c9   :  { %v482_v4 = vpop.permute.xlu0 %481  ;;  %v521_v52 = vsel %vm513_vm5, %v2011_v1, 0.0 }
 0x1ca   :  { %vm514_vm6 = vcmp.eq.s32.totalorder %v1986_v28, %v482_v4  ;;  %v533_v54 = vsel %vm95_vm0, %v521_v52, 0.0  ;;  %v434_v4 = vmul.f32 0.6931472, %v1677_v42  ;;  %v449_v48 = vadd.f32 %v436_v45, %v2084_v25 }
 0x1cb   :  { %534 = vadd.xlane.f32.xlu1 %v533_v54  ;;  %v522_v49 = vsel %vm514_vm6, %v2053_v18, 0.0 }
 0x1cc   :  { %v536_v57 = vsel %vm95_vm0, %v522_v49, 0.0  ;;  %v1683_v49 = vpop.eup %1682  ;;  %v448_v39 = vadd.f32 %v434_v4, %v2098_v40 }
 0x1cd   :  { %537 = vadd.xlane.f32.xlu0 %v536_v57 }
 0x1cf   :  { %v503_v24 = vpop.permute.xlu2 %502 }
 0x1d0   :  { %vm517_vm7 = vcmp.eq.s32.totalorder %v1986_v28, %v503_v24  ;;  %v450_v24 = vadd.f32 %v438_v35, %v2118_v58 }
 0x1d1   :  { %v496_v8 = vpop.permute.xlu0 %495  ;;  %v525_v9 = vsel %vm517_vm7, %v2067_v22, 0.0 }
 0x1d2   :  { %vm516_vm8 = vcmp.eq.s32.totalorder %v1986_v28, %v496_v8  ;;  %v545_v18 = vsel %vm95_vm0, %v525_v9, 0.0  ;;  %v1685_v9 = vpop.eup %1684 }
 0x1d3   :  { %v524_v1 = vsel %vm516_vm8, %v2024_v3, 0.0  ;;  %v444_v51 = vmul.f32 0.6931472, %v1685_v9 }
 0x1d4   :  { %v542_v61 = vsel %vm95_vm0, %v524_v1, 0.0 }
 0x1d5   :  { %546 = vadd.xlane.f32.xlu0 %v545_v18  ;;  %543 = vadd.xlane.f32.xlu1 %v542_v61  ;;  %v453_v11 = vadd.f32 %v444_v51, %v2129_v7 }
 0x1db   :  { %v468_v22 = vpop.permute.xlu1 %467 }
 0x1dc   :  { %vm512_vm9 = vcmp.eq.s32.totalorder %v1986_v28, %v468_v22  ;;  %v440_v22 = vmul.f32 0.6931472, %v1683_v49 }
 0x1dd   :  { %v520_v3 = vsel %vm512_vm9, %v2029_v6, 0.0  ;;  %342 = vadd.xlane.f32.xlu1 %v341_v55  ;;  %614 = vmax.xlane.f32.xlu0 %v613_v50  ;;  %vm1142_vm9 = vcmask 130048  }
 0x1de   :  { %v530_v63 = vsel %vm95_vm0, %v520_v3, 0.0 }
 0x1df   :  { %531 = vadd.xlane.f32.xlu2 %v530_v63 }
 0x1e3   :  { %v489_v47 = vpop.permute.xlu1 %488 }
 0x1e4   :  { %vm515_vm4 = vcmp.eq.s32.totalorder %v1986_v28, %v489_v47  ;;  %v452_v47 = vadd.f32 %v442_v62, %v2096_v5 }
 0x1e5   :  { %v523_v2 = vsel %vm515_vm4, %v2046_v16, 0.0  ;;  %623 = vmax.xlane.f32.xlu0 %v622_v13  ;;  %v451_v13 = vadd.f32 %v440_v22, %v2113_v53 }
 0x1e6   :  { %v539_v6 = vsel %vm95_vm0, %v523_v2, 0.0 }
 0x1e7   :  { %540 = vadd.xlane.f32.xlu2 %v539_v6 }
 0x1eb   :  { %v510_v14 = vpop.permute.xlu1 %509 }
 0x1ec   :  { %vm518_vm5 = vcmp.eq.s32.totalorder %v1986_v28, %v510_v14 }
 0x1ed   :  { %v526_v16 = vsel %vm518_vm5, %v2060_v20, 0.0  ;;  %632 = vmax.xlane.f32.xlu0 %v631_v21  ;;  %v2224_v20 = vld [vmem:[%s2793_s7 + $0x10] sm:$0x7] }
 0x1ee   :  { %v548_v19 = vsel %vm95_vm0, %v526_v16, 0.0  ;;  %v625_v29 = vsel %vm612_vm10, %v2224_v20, -inf }
 0x1ef   :  { %549 = vadd.xlane.f32.xlu2 %v548_v19  ;;  %v1687_v19 = vpop.eup %1686 }
 0x1f7   :  { %617 = vmax.xlane.f32.xlu2 %v616_v27 }
 0x1ff   :  { %626 = vmax.xlane.f32.xlu2 %v625_v29 }
 0x207   :  { %635 = vmax.xlane.f32.xlu2 %v634_v46 }
 0x238   :  { %v529_v10 = vpop.xlane.xlu0 %528 }
 0x239   :  { %v551_v57 = vsub.f32 %v447_v41, %v529_v10  ;;  %v446_v10 = vmul.f32 0.6931472, %v1687_v19 }
 0x23b   :  { %v575_v25 = vperm.slane %v551_v57, %v1986_v28  ;;  %v454_v42 = vadd.f32 %v446_v10, %v2123_v12 }
 0x23e   :  { %v535_v31 = vpop.xlane.xlu1 %534 }
 0x23f   :  { %v553_v38 = vsub.f32 %v449_v48, %v535_v31 }
 0x240   :  { %v538_v52 = vpop.xlane.xlu0 %537 }
 0x241   :  { %v554_v60 = vsub.f32 %v450_v24, %v538_v52  ;;  %v577_v58 = vperm.slane %v553_v38, %v1986_v28  ;;  %v1768_v38 = vmov 1  }
 0x242   :  { %1617 = vset.pattern.permute.xlu0 %v1768_v38 }
 0x243   :  { %v578_v40 = vperm.slane %v554_v60, %v1986_v28 }
 0x248   :  { %v544_v34 = vpop.xlane.xlu1 %543  ;;  %v547_v2 = vpop.xlane.xlu0 %546 }
 0x249   :  { %v556_v21 = vsub.f32 %v452_v47, %v544_v34  ;;  %v557_v29 = vsub.f32 %v453_v11, %v547_v2 }
 0x24b   :  { %v580_v5 = vperm.slane %v556_v21, %v1986_v28  ;;  %v581_v33 = vperm.slane %v557_v29, %v1986_v28 }
 0x250   :  { %v343_v54 = vpop.xlane.xlu1 %342  ;;  %v2265_v52 = vpop.xlane.xlu0 %614 }
 0x251   :  { %v344_v8 = vrot.slane %v343_v54, 4  ;;  %v637_v49 = vsub.f32 %v2190_v0, %v2265_v52 }
 0x252   :  { %v532_v1 = vpop.xlane.xlu2 %531 }
 0x253   :  { %v552_v18 = vsub.f32 %v448_v39, %v532_v1  ;;  %v345_v61 = vadd.f32 %v344_v8, %v343_v54  ;;  %v2275_v54 = vld [vmem:[%s2793_s7 + $0x8] sm:$0x7]  ;;  %v645_v39 = vmul.f32 1.442695, %v637_v49 }
 0x254   :  { %v619_v57 = vsel %vm612_vm10, %v2275_v54, -inf }
 0x255   :  { %v576_v55 = vperm.slane %v552_v18, %v1986_v28  ;;  %v346_v3 = vrot.slane %v345_v61, 2  ;;  %v2291_v18 = vld [vmem:[%s2793_s7 + $0x14] sm:$0x7] }
 0x256   :  { %v628_v22 = vsel %vm612_vm10, %v2291_v18, -inf }
 0x257   :  { %v583_v63 = vsel %vm325_vm11, %v576_v55, %v575_v25  ;;  %v347_v50 = vadd.f32 %v346_v3, %v345_v61 }
 0x258   :  { %v584_v6 = vsel %vm327_vm12, %v577_v58, %v583_v63  ;;  %v2283_v8 = vpop.xlane.xlu0 %623 }
 0x259   :  { %v585_v14 = vsel %vm329_vm13, %v578_v40, %v584_v6  ;;  %v348_v16 = vrot.slane %v347_v50, 1  ;;  %v640_v62 = vsub.f32 %v2200_v23, %v2283_v8 }
 0x25a   :  { %v541_v27 = vpop.xlane.xlu2 %540 }
 0x25b   :  { %v555_v46 = vsub.f32 %v451_v13, %v541_v27  ;;  %v349_v31 = vadd.f32 %v348_v16, %v347_v50  ;;  %v651_v25 = vmul.f32 1.442695, %v640_v62  ;;  %v611_v27 = vld [vmem:[%s2797_s11] sm:$0xff]  ;;  %v1769_v62 = vmov 0  }
 0x25c   :  { %v723_v29 = vperm.slane %v611_v27, 2 }
 0x25d   :  { %v579_v32 = vperm.slane %v555_v46, %v1986_v28  ;;  %1593 = vpush %v349_v31  ;;  %v716_v46 = vperm.slane %v611_v27, 1  ;;  %v744_v31 = vperm.slane %v611_v27, 5 }
 0x25f   :  { %v586_v7 = vsel %vm331_vm14, %v579_v32, %v585_v14 }
 0x260   :  { %v587_v53 = vsel %vm333_vm15, %v580_v5, %v586_v7  ;;  %v2302_v58 = vpop.xlane.xlu0 %632 }
 0x261   :  { %v588_v34 = vsel %vm335_vm2, %v581_v33, %v587_v53  ;;  %v643_v47 = vsub.f32 %v2207_v17, %v2302_v58 }
 0x262   :  { %v550_v43 = vpop.xlane.xlu2 %549 }
 0x263   :  { %v558_v44 = vsub.f32 %v454_v42, %v550_v43  ;;  %v657_v6 = vmul.f32 1.442695, %v643_v47  ;;  %v758_v47 = vperm.slane %v611_v27, 7 }
 0x265   :  { %v582_v45 = vperm.slane %v558_v44, %v1986_v28 }
 0x267   :  { %v589_v4 = vsel %vm337_vm3, %v582_v45, %v588_v34  ;;  %v730_v45 = vperm.slane %v611_v27, 3 }
 0x268   :  { %v591_v35 = vmul.f32 %v2177_v56, %v589_v4 }
 0x26a   :  { %v2267_v41 = vpop.xlane.xlu2 %617  ;;  %v592_v36 = vsel %vm64_vm1, %v591_v35, 0.0 }
 0x26b   :  { %v638_v48 = vsub.f32 %v2217_v26, %v2267_v41  ;;  %593 = vadd.xlane.f32.xlu1 %v592_v36 }
 0x26d   :  { %v647_v12 = vmul.f32 1.442695, %v638_v48 }
 0x26f   :  { %1688 = vpow2.f32 %v647_v12  ;;  %v751_v12 = vperm.slane %v611_v27, 6 }
 0x270   :  { %1690 = vpow2.f32 %v645_v39 }
 0x272   :  { %v2281_v24 = vpop.xlane.xlu2 %626 }
 0x273   :  { %v641_v9 = vsub.f32 %v2224_v20, %v2281_v24  ;;  %620 = vmax.xlane.f32.xlu1 %v619_v57 }
 0x275   :  { %v1689_v1 = vpop.eup %1688  ;;  %v653_v60 = vmul.f32 1.442695, %v641_v9 }
 0x276   :  { %v664_v61 = vsel %vm612_vm10, %v1689_v1, 0.0  ;;  %v1691_v3 = vpop.eup %1690 }
 0x277   :  { %1692 = vpow2.f32 %v653_v60  ;;  %665 = vadd.xlane.f32.xlu0 %v664_v61  ;;  %v661_v2 = vsel %vm612_vm10, %v1691_v3, 0.0  ;;  %v709_v60 = vperm.slane %v611_v27, 0  ;;  %v1752_v3 = vld [vmem:[%s2795_s9] sm:$0xff] }
 0x278   :  { %1694 = vpow2.f32 %v651_v25 }
 0x27a   :  { %v2298_v51 = vpop.xlane.xlu2 %635 }
 0x27b   :  { %v644_v55 = vsub.f32 %v2231_v30, %v2298_v51  ;;  %629 = vmax.xlane.f32.xlu1 %v628_v22 }
 0x27d   :  { %v1693_v40 = vpop.eup %1692  ;;  %v659_v63 = vmul.f32 1.442695, %v644_v55 }
 0x27e   :  { %v673_v50 = vsel %vm612_vm10, %v1693_v40, 0.0  ;;  %v1695_v11 = vpop.eup %1694 }
 0x27f   :  { %1696 = vpow2.f32 %v659_v63  ;;  %674 = vadd.xlane.f32.xlu0 %v673_v50  ;;  %v670_v16 = vsel %vm612_vm10, %v1695_v11, 0.0  ;;  %v737_v50 = vperm.slane %v611_v27, 4  ;;  %v1130_v27 = vld [vmem:[%s2801_s15 + $0x10] sm:$0xff] }
 0x280   :  { %1698 = vpow2.f32 %v657_v6 }
 0x283   :  { %662 = vadd.xlane.f32.xlu1 %v661_v2 }
 0x285   :  { %v1697_v13 = vpop.eup %1696 }
 0x286   :  { %v682_v14 = vsel %vm612_vm10, %v1697_v13, 0.0  ;;  %v1699_v19 = vpop.eup %1698 }
 0x287   :  { %683 = vadd.xlane.f32.xlu0 %v682_v14  ;;  %v679_v21 = vsel %vm612_vm10, %v1699_v19, 0.0  ;;  %v1134_v14 = vld [vmem:[%s2801_s15 + $0x30] sm:$0xff] }
 0x28b   :  { %671 = vadd.xlane.f32.xlu1 %v670_v16  ;;  %v1770_v16 = vmov 0.0  }
 0x293   :  { %680 = vadd.xlane.f32.xlu1 %v679_v21 }
 0x29b   :  { %1453 = vperm.xlu0 %1617, %v2137_v59  }
 0x2a3   :  { %1618 = vset.pattern.permute.xlu0 %v1906_v15 }
 0x2ab   :  { %728 = vperm.xlu0 %1618, %v723_v29   ;;  %v1133_v29 = vld [vmem:[%s2801_s15 + $0x28] sm:$0xff] }
 0x2ac   :  { %721 = vperm.xlu1 %1615, %v716_v46   ;;  %1375 = vmatpush.msra.mxu2 %v1133_v29  ;;  %v1132_v46 = vld [vmem:[%s2801_s15 + $0x20] sm:$0xff] }
 0x2ae   :  { %1376 = vmatpush.msra.mxu2 %v1132_v46 }
 0x2b3   :  { %749 = vperm.xlu0 %1618, %v744_v31  }
 0x2b4   :  { %1619 = vset.pattern.permute.xlu1 %v1768_v38 }
 0x2b5   :  { %1239 = vperm.xlu1 %1619, %v1938_v37  }
 0x2bd   :  { %1620 = vset.pattern.permute.xlu1 %v1906_v15 }
 0x2c5   :  { %735 = vperm.xlu1 %1620, %v730_v45  }
 0x2cd   :  { %756 = vperm.xlu1 %1620, %v751_v12  }
 0x2de   :  { %v594_v10 = vpop.xlane.xlu1 %593 }
 0x2df   :  { %v595_v32 = vrot.slane %v594_v10, 4 }
 0x2e1   :  { %v596_v5 = vadd.f32 %v595_v32, %v594_v10  ;;  %v1129_v10 = vld [vmem:[%s2801_s15 + $0x8] sm:$0xff] }
 0x2e2   :  { %1160 = vmatpush.msra.mxu0 %v1129_v10 }
 0x2e3   :  { %v597_v33 = vrot.slane %v596_v5, 2 }
 0x2e5   :  { %v598_v7 = vadd.f32 %v597_v33, %v596_v5  ;;  %v1128_v33 = vld [vmem:[%s2801_s15] sm:$0xff] }
 0x2e6   :  { %v2319_v53 = vpop.xlane.xlu1 %620  ;;  %1161 = vmatpush.msra.mxu0 %v1128_v33 }
 0x2e7   :  { %v639_v42 = vsub.f32 %v2275_v54, %v2319_v53  ;;  %v599_v34 = vrot.slane %v598_v7, 1 }
 0x2e9   :  { %v649_v43 = vmul.f32 1.442695, %v639_v42  ;;  %v600_v44 = vadd.f32 %v599_v34, %v598_v7 }
 0x2ea   :  { %v2328_v49 = vpop.xlane.xlu0 %665 }
 0x2eb   :  { %1700 = vpow2.f32 %v649_v43  ;;  %1595 = vpush %v600_v44 }
 0x2ee   :  { %v2323_v37 = vpop.xlane.xlu1 %629 }
 0x2ef   :  { %v642_v4 = vsub.f32 %v2291_v18, %v2323_v37 }
 0x2f1   :  { %v1701_v35 = vpop.eup %1700  ;;  %v655_v36 = vmul.f32 1.442695, %v642_v4 }
 0x2f2   :  { %v667_v48 = vsel %vm612_vm10, %v1701_v35, 0.0  ;;  %v2331_v9 = vpop.xlane.xlu0 %674 }
 0x2f3   :  { %1702 = vpow2.f32 %v655_v36  ;;  %668 = vadd.xlane.f32.xlu2 %v667_v48 }
 0x2f4   :  { %1704 = vlog2.f32 %v2328_v49 }
 0x2f9   :  { %v1703_v57 = vpop.eup %1702 }
 0x2fa   :  { %v676_v39 = vsel %vm612_vm10, %v1703_v57, 0.0  ;;  %v2333_v1 = vpop.xlane.xlu0 %683  ;;  %v2401_v57 = vld [vmem:[%s2794_s8] sm:$0x7] }
 0x2fb   :  { %677 = vadd.xlane.f32.xlu2 %v676_v39 }
 0x30d   :  { %v1454_v61 = vpop.permute.xlu0 %1453 }
 0x30e   :  { %vm1455_vm7 = vcmp.eq.s32.totalorder %v1986_v28, %v1454_v61 }
 0x30f   :  { %v1589_v19 = vsel %vm1455_vm7, 1.0, %v1770_v16 }
 0x313   :  { %714 = vperm.xlu2 %1613, %v709_v60  }
 0x31b   :  { %1616 = vset.pattern.permute.xlu2 %v1769_v62  ;;  %v2411_v62 = vld [vmem:[%s2794_s8 + $0xc] sm:$0x7] }
 0x31c   :  { %1353 = vperm.xlu2 %1616, %v2137_v59  }
 0x31d   :  { %v729_v22 = vpop.permute.xlu0 %728 }
 0x31e   :  { %vm767_vm0 = vcmp.eq.s32.totalorder %v1986_v28, %v729_v22 }
 0x31f   :  { %v775_v25 = vsel %vm767_vm0, %v2275_v54, 0.0  ;;  %v2346_v54 = vpop.xlane.xlu1 %662 }
 0x320   :  { %v787_v55 = vsel %vm612_vm10, %v775_v25, 0.0  ;;  %v874_v25 = vsel %vm612_vm10, %v2411_v62, -inf }
 0x321   :  { %788 = vadd.xlane.f32.xlu0 %v787_v55 }
 0x324   :  { %1137 = vperm.xlu2 %1616, %v1752_v3  }
 0x325   :  { %v750_v40 = vpop.permute.xlu0 %749 }
 0x326   :  { %vm770_vm6 = vcmp.eq.s32.totalorder %v1986_v28, %v750_v40 }
 0x327   :  { %v778_v63 = vsel %vm770_vm6, %v2291_v18, 0.0  ;;  %v2348_v2 = vpop.xlane.xlu1 %671  ;;  %v1135_v18 = vld [vmem:[%s2801_s15 + $0x38] sm:$0xff] }
 0x328   :  { %v796_v59 = vsel %vm612_vm10, %v778_v63, 0.0  ;;  %1475 = vmatpush.msra.mxu3 %v1135_v18  ;;  %v2428_v63 = vld [vmem:[%s2794_s8 + $0x10] sm:$0x7] }
 0x329   :  { %797 = vadd.xlane.f32.xlu0 %v796_v59  ;;  %v2435_v59 = vld [vmem:[%s2794_s8 + $0x18] sm:$0x7] }
 0x32a   :  { %1476 = vmatpush.msra.mxu3 %v1134_v14 }
 0x32b   :  { %1590 = vmatmul.msk.f32.vlgmr.msra.gmra.mxu3 %vm1142_vm9, %v1589_v19 }
 0x32c   :  { %1621 = vset.pattern.permute.xlu2 %v1906_v15  ;;  %v1131_v15 = vld [vmem:[%s2801_s15 + $0x18] sm:$0xff] }
 0x32d   :  { %1261 = vmatpush.msra.mxu1 %v1131_v15 }
 0x32f   :  { %v2350_v6 = vpop.xlane.xlu1 %680  ;;  %1262 = vmatpush.msra.mxu1 %v1130_v27 }
 0x334   :  { %742 = vperm.xlu2 %1621, %v737_v50   ;;  %v883_v50 = vsel %vm612_vm10, %v2435_v59, -inf }
 0x337   :  { %v722_v11 = vpop.permute.xlu1 %721 }
 0x338   :  { %vm766_vm4 = vcmp.eq.s32.totalorder %v1986_v28, %v722_v11 }
 0x339   :  { %v774_v31 = vsel %vm766_vm4, %v2217_v26, 0.0 }
 0x33a   :  { %v784_v32 = vsel %vm612_vm10, %v774_v31, 0.0 }
 0x33c   :  { %763 = vperm.xlu2 %1621, %v758_v47   ;;  %v1705_v47 = vpop.eup %1704 }
 0x33d   :  { %v688_v18 = vmul.f32 0.6931472, %v1705_v47 }
 0x33f   :  { %v1240_v13 = vpop.permute.xlu1 %1239 }
 0x340   :  { %vm1241_vm8 = vcmp.eq.s32.totalorder %v1986_v28, %v1240_v13 }
 0x341   :  { %v1585_v21 = vsel %vm1241_vm8, 1.0, %v1770_v16 }
 0x342   :  { %1586 = vmatmul.msk.f32.vlgmr.msra.gmra.mxu1 %vm1142_vm9, %v1585_v21  ;;  %v702_v21 = vadd.f32 %v688_v18, %v2267_v41 }
 0x347   :  { %v736_v42 = vpop.permute.xlu1 %735 }
 0x348   :  { %vm768_vm0 = vcmp.eq.s32.totalorder %v1986_v28, %v736_v42 }
 0x349   :  { %v776_v44 = vsel %vm768_vm0, %v2200_v23, 0.0 }
 0x34a   :  { %v790_v35 = vsel %vm612_vm10, %v776_v44, 0.0 }
 0x34f   :  { %v757_v4 = vpop.permute.xlu1 %756 }
 0x350   :  { %vm771_vm7 = vcmp.eq.s32.totalorder %v1986_v28, %v757_v4 }
 0x365   :  { %785 = vadd.xlane.f32.xlu2 %v784_v32 }
 0x366   :  { %v669_v5 = vpop.xlane.xlu2 %668 }
 0x367   :  { %1706 = vlog2.f32 %v669_v5 }
 0x368   :  { %1708 = vlog2.f32 %v2346_v54 }
 0x369   :  { %1710 = vlog2.f32 %v2348_v2 }
 0x36a   :  { %1712 = vlog2.f32 %v2331_v9 }
 0x36d   :  { %v1707_v11 = vpop.eup %1706 }
 0x36e   :  { %v2383_v7 = vpop.xlane.xlu2 %677  ;;  %v1709_v13 = vpop.eup %1708  ;;  %v690_v15 = vmul.f32 0.6931472, %v1707_v11 }
 0x36f   :  { %v686_v14 = vmul.f32 0.6931472, %v1709_v13  ;;  %v1711_v46 = vpop.eup %1710  ;;  %1714 = vlog2.f32 %v2383_v7 }
 0x370   :  { %v703_v27 = vadd.f32 %v690_v15, %v2319_v53  ;;  %v692_v32 = vmul.f32 0.6931472, %v1711_v46  ;;  %1716 = vlog2.f32 %v2350_v6  ;;  %v1713_v44 = vpop.eup %1712 }
 0x371   :  { %v701_v49 = vadd.f32 %v686_v14, %v2265_v52  ;;  %1718 = vlog2.f32 %v2333_v1  ;;  %v2480_v14 = vld [vmem:[%s2794_s8 + $0x8] sm:$0x7] }
 0x372   :  { %v704_v53 = vadd.f32 %v692_v32, %v2283_v8 }
 0x376   :  { %v715_v34 = vpop.permute.xlu2 %714 }
 0x377   :  { %vm765_vm5 = vcmp.eq.s32.totalorder %v1986_v28, %v715_v34 }
 0x378   :  { %v773_v26 = vsel %vm765_vm5, %v2190_v0, 0.0  ;;  %v779_v0 = vsel %vm771_vm7, %v2207_v17, 0.0  ;;  %v865_v17 = vsel %vm612_vm10, %v2401_v57, -inf  ;;  %vm1322_vm7 = vcmask 261121  }
 0x379   :  { %v781_v43 = vsel %vm612_vm10, %v773_v26, 0.0  ;;  %v799_v12 = vsel %vm612_vm10, %v779_v0, 0.0 }
 0x37a   :  { %782 = vadd.xlane.f32.xlu1 %v781_v43 }
 0x37e   :  { %v1354_v45 = vpop.permute.xlu2 %1353 }
 0x37f   :  { %vm1355_vm6 = vcmp.eq.s32.totalorder %v1986_v28, %v1354_v45  ;;  %v1715_v45 = vpop.eup %1714 }
 0x380   :  { %v1587_v36 = vsel %vm1355_vm6, 1.0, %v1770_v16  ;;  %v1717_v4 = vpop.eup %1716 }
 0x381   :  { %1588 = vmatmul.msk.f32.vlgmr.msra.gmra.mxu2 %vm1142_vm9, %v1587_v36  ;;  %v694_v36 = vmul.f32 0.6931472, %v1713_v44  ;;  %v698_v8 = vmul.f32 0.6931472, %v1717_v4 }
 0x382   :  { %791 = vadd.xlane.f32.xlu1 %v790_v35  ;;  %v696_v35 = vmul.f32 0.6931472, %v1715_v45 }
 0x383   :  { %v707_v7 = vadd.f32 %v698_v8, %v2302_v58  ;;  %v705_v6 = vadd.f32 %v694_v36, %v2281_v24 }
 0x384   :  { %v706_v9 = vadd.f32 %v696_v35, %v2323_v37 }
 0x386   :  { %v1138_v48 = vpop.permute.xlu2 %1137 }
 0x387   :  { %vm1139_vm8 = vcmp.eq.s32.totalorder %v1986_v28, %v1138_v48 }
 0x388   :  { %v1583_v23 = vsel %vm1139_vm8, 1.0, %v1770_v16 }
 0x389   :  { %1584 = vmatmul.msk.f32.vlgmr.msra.gmra.mxu0 %vm1142_vm9, %v1583_v23 }
 0x38a   :  { %800 = vadd.xlane.f32.xlu1 %v799_v12  ;;  %v1719_v12 = vpop.eup %1718 }
 0x38e   :  { %v743_v39 = vpop.permute.xlu2 %742 }
 0x38f   :  { %vm769_vm4 = vcmp.eq.s32.totalorder %v1986_v28, %v743_v39 }
 0x390   :  { %v777_v60 = vsel %vm769_vm4, %v2224_v20, 0.0  ;;  %v2421_v20 = vld [vmem:[%s2794_s8 + $0x4] sm:$0x7] }
 0x391   :  { %v793_v61 = vsel %vm612_vm10, %v777_v60, 0.0  ;;  %v868_v40 = vsel %vm612_vm10, %v2421_v20, -inf }
 0x392   :  { %794 = vadd.xlane.f32.xlu2 %v793_v61  ;;  %866 = vmax.xlane.f32.xlu1 %v865_v17  ;;  %v700_v61 = vmul.f32 0.6931472, %v1719_v12 }
 0x394   :  { %v789_v19 = vpop.xlane.xlu0 %788  ;;  %v708_v58 = vadd.f32 %v700_v61, %v2298_v51 }
 0x395   :  { %v807_v31 = vsub.f32 %v703_v27, %v789_v19 }
 0x396   :  { %v764_v22 = vpop.permute.xlu2 %763 }
 0x397   :  { %vm772_vm9 = vcmp.eq.s32.totalorder %v1986_v28, %v764_v22  ;;  %v831_v33 = vperm.slane %v807_v31, %v1986_v28  ;;  %v2495_v31 = vld [vmem:[%s2794_s8 + $0x14] sm:$0x7] }
 0x398   :  { %v780_v55 = vsel %vm772_vm9, %v2231_v30, 0.0  ;;  %v877_v30 = vsel %vm612_vm10, %v2428_v63, -inf  ;;  %v880_v32 = vsel %vm612_vm10, %v2495_v31, -inf }
 0x399   :  { %v802_v3 = vsel %vm612_vm10, %v780_v55, 0.0 }
 0x39a   :  { %803 = vadd.xlane.f32.xlu2 %v802_v3  ;;  %875 = vmax.xlane.f32.xlu1 %v874_v25 }
 0x39c   :  { %v798_v0 = vpop.xlane.xlu0 %797 }
 0x39d   :  { %v810_v23 = vsub.f32 %v706_v9, %v798_v0 }
 0x39f   :  { %v834_v1 = vperm.slane %v810_v23, %v1986_v28 }
 0x3a2   :  { %869 = vmax.xlane.f32.xlu2 %v868_v40  ;;  %884 = vmax.xlane.f32.xlu1 %v883_v50 }
 0x3aa   :  { %878 = vmax.xlane.f32.xlu2 %v877_v30 }
 0x3d8   :  { %v786_v16 = vpop.xlane.xlu2 %785 }
 0x3d9   :  { %v806_v29 = vsub.f32 %v702_v21, %v786_v16 }
 0x3db   :  { %v830_v5 = vperm.slane %v806_v29, %v1986_v28 }
 0x3ed   :  { %v783_v54 = vpop.xlane.xlu1 %782 }
 0x3ee   :  { %v805_v10 = vsub.f32 %v701_v49, %v783_v54 }
 0x3f0   :  { %v829_v2 = vperm.slane %v805_v10, %v1986_v28 }
 0x3f2   :  { %v837_v42 = vsel %vm325_vm11, %v830_v5, %v829_v2 }
 0x3f3   :  { %v838_v41 = vsel %vm327_vm12, %v831_v33, %v837_v42 }
 0x3f5   :  { %v792_v52 = vpop.xlane.xlu1 %791 }
 0x3f6   :  { %v808_v34 = vsub.f32 %v704_v53, %v792_v52 }
 0x3f8   :  { %v832_v26 = vperm.slane %v808_v34, %v1986_v28  ;;  %v2508_v34 = vld [vmem:[%s2794_s8 + $0x1c] sm:$0x7] }
 0x3fa   :  { %v839_v43 = vsel %vm329_vm13, %v832_v26, %v838_v41  ;;  %v886_v26 = vsel %vm612_vm10, %v2508_v34, -inf }
 0x3fb   :  { %887 = vmax.xlane.f32.xlu2 %v886_v26 }
 0x3fd   :  { %v801_v48 = vpop.xlane.xlu1 %800 }
 0x3fe   :  { %v811_v17 = vsub.f32 %v707_v7, %v801_v48 }
 0x400   :  { %v835_v25 = vperm.slane %v811_v17, %v1986_v28 }
 0x405   :  { %v795_v39 = vpop.xlane.xlu2 %794  ;;  %v2473_v18 = vpop.xlane.xlu1 %866 }
 0x406   :  { %v809_v60 = vsub.f32 %v705_v6, %v795_v39  ;;  %v889_v16 = vsub.f32 %v2401_v57, %v2473_v18 }
 0x408   :  { %v833_v22 = vperm.slane %v809_v60, %v1986_v28  ;;  %v897_v21 = vmul.f32 1.442695, %v889_v16 }
 0x40a   :  { %v840_v55 = vsel %vm331_vm14, %v833_v22, %v839_v43  ;;  %v864_v43 = vld [vmem:[%s2798_s12] sm:$0xff]  ;;  %s1771_s12 = smov [#allocation2]  }
 0x40b   :  { %v841_v37 = vsel %vm333_vm15, %v834_v1, %v840_v55  ;;  %v975_v44 = vperm.slane %v864_v43, 2  ;;  %v968_v45 = vperm.slane %v864_v43, 1  ;;  %v1003_v4 = vperm.slane %v864_v43, 6 }
 0x40c   :  { %v842_v24 = vsel %vm335_vm2, %v835_v25, %v841_v37  ;;  %v982_v35 = vperm.slane %v864_v43, 3  ;;  %v996_v36 = vperm.slane %v864_v43, 5 }
 0x40d   :  { %v804_v3 = vpop.xlane.xlu2 %803  ;;  %v2490_v29 = vpop.xlane.xlu1 %875 }
 0x40e   :  { %v812_v40 = vsub.f32 %v708_v58, %v804_v3  ;;  %v892_v10 = vsub.f32 %v2411_v62, %v2490_v29 }
 0x410   :  { %v836_v30 = vperm.slane %v812_v40, %v1986_v28  ;;  %v903_v5 = vmul.f32 1.442695, %v892_v10 }
 0x412   :  { %v843_v50 = vsel %vm337_vm3, %v836_v30, %v842_v24 }
 0x413   :  { %v845_v47 = vmul.f32 %v2177_v56, %v843_v50  ;;  %v871_v56 = vsel %vm612_vm10, %v2480_v14, -inf  ;;  %v961_v50 = vperm.slane %v864_v43, 0 }
 0x415   :  { %v2470_v11 = vpop.xlane.xlu2 %869  ;;  %v846_v13 = vsel %vm64_vm1, %v845_v47, 0.0  ;;  %v2515_v8 = vpop.xlane.xlu1 %884 }
 0x416   :  { %v890_v15 = vsub.f32 %v2421_v20, %v2470_v11  ;;  %847 = vadd.xlane.f32.xlu0 %v846_v13  ;;  %v895_v0 = vsub.f32 %v2435_v59, %v2515_v8  ;;  %v989_v13 = vperm.slane %v864_v43, 4 }
 0x418   :  { %v899_v51 = vmul.f32 1.442695, %v890_v15  ;;  %v909_v9 = vmul.f32 1.442695, %v895_v0 }
 0x41a   :  { %1720 = vpow2.f32 %v899_v51 }
 0x41b   :  { %1722 = vpow2.f32 %v897_v21 }
 0x41d   :  { %v2486_v19 = vpop.xlane.xlu2 %878 }
 0x41e   :  { %v893_v27 = vsub.f32 %v2428_v63, %v2486_v19  ;;  %872 = vmax.xlane.f32.xlu0 %v871_v56  ;;  %v1010_v56 = vperm.slane %v864_v43, 7  ;;  %v2573_v43 = vld [vmem:[%s2799_s13 + $0x6] sm:$0x3] }
 0x420   :  { %v1721_v49 = vpop.eup %1720  ;;  %v905_v46 = vmul.f32 1.442695, %v893_v27 }
 0x421   :  { %v916_v54 = vsel %vm612_vm10, %v1721_v49, 0.0  ;;  %v1723_v2 = vpop.eup %1722 }
 0x422   :  { %1724 = vpow2.f32 %v905_v46  ;;  %917 = vadd.xlane.f32.xlu1 %v916_v54  ;;  %v913_v41 = vsel %vm612_vm10, %v1723_v2, 0.0  ;;  %v2547_v54 = vld [vmem:[%s2799_s13 + $0x2] sm:$0x3] }
 0x423   :  { %1726 = vpow2.f32 %v903_v5 }
 0x424   :  { %1728 = vpow2.f32 %v909_v9 }
 0x426   :  { %881 = vmax.xlane.f32.xlu0 %v880_v32 }
 0x428   :  { %v1725_v33 = vpop.eup %1724 }
 0x429   :  { %v925_v42 = vsel %vm612_vm10, %v1725_v33, 0.0  ;;  %v1727_v53 = vpop.eup %1726  ;;  %v2560_v33 = vld [vmem:[%s2799_s13 + $0x4] sm:$0x3] }
 0x42a   :  { %926 = vadd.xlane.f32.xlu1 %v925_v42  ;;  %v922_v52 = vsel %vm612_vm10, %v1727_v53, 0.0  ;;  %v1729_v48 = vpop.eup %1728 }
 0x42b   :  { %v931_v7 = vsel %vm612_vm10, %v1729_v48, 0.0  ;;  %v2589_v48 = vld [vmem:[%s2799_s13 + $0x8] sm:$0x3] }
 0x42e   :  { %914 = vadd.xlane.f32.xlu0 %v913_v41  ;;  %v2565_v41 = vld [vmem:[%s2799_s13] sm:$0x3] }
 0x436   :  { %923 = vadd.xlane.f32.xlu0 %v922_v52 }
 0x443   :  { %980 = vperm.xlu1 %1620, %v975_v44  }
 0x44a   :  { %973 = vperm.xlu0 %1618, %v968_v45   ;;  %v2579_v45 = vld [vmem:[%s2800_s14 + $0x2] sm:$0x3] }
 0x44b   :  { %1008 = vperm.xlu1 %1620, %v1003_v4   ;;  %v2581_v4 = vpop.f32.mrf.mxu3 }
 0x452   :  { %987 = vperm.xlu0 %1618, %v982_v35  }
 0x45a   :  { %1001 = vperm.xlu0 %1618, %v996_v36  }
 0x462   :  { %1622 = vset.pattern.permute.xlu0 %v1768_v38 }
 0x46e   :  { %v2538_v21 = vpop.xlane.xlu2 %887 }
 0x46f   :  { %v896_v49 = vsub.f32 %v2508_v34, %v2538_v21 }
 0x471   :  { %v911_v46 = vmul.f32 1.442695, %v896_v49 }
 0x475   :  { %932 = vadd.xlane.f32.xlu1 %v931_v7 }
 0x489   :  { %v848_v6 = vpop.xlane.xlu0 %847 }
 0x48a   :  { %v849_v12 = vrot.slane %v848_v6, 4 }
 0x48c   :  { %v850_v23 = vadd.f32 %v849_v12, %v848_v6  ;;  %v1483_v12 = vrot.slane %v2581_v4, 1 }
 0x48e   :  { %v851_v39 = vrot.slane %v850_v23, 2 }
 0x490   :  { %v852_v17 = vadd.f32 %v851_v39, %v850_v23  ;;  %v1498_v23 = vsub.f32 %v2579_v45, %v2581_v4 }
 0x491   :  { %v2521_v60 = vpop.xlane.xlu0 %872 }
 0x492   :  { %v891_v61 = vsub.f32 %v2480_v14, %v2521_v60  ;;  %v853_v22 = vrot.slane %v852_v17, 1 }
 0x494   :  { %v901_v1 = vmul.f32 1.442695, %v891_v61  ;;  %v854_v25 = vadd.f32 %v853_v22, %v852_v17  ;;  %v1482_v17 = vrot.slane %v2581_v4, 7 }
 0x495   :  { %v2540_v27 = vpop.xlane.xlu1 %917 }
 0x496   :  { %1730 = vpow2.f32 %v901_v1  ;;  %1597 = vpush %v854_v25  ;;  %v2601_v1 = vld [vmem:[%s2800_s14 + $0x4] sm:$0x3]  ;;  %v2606_v25 = vld [vmem:[%s2800_s14] sm:$0x3] }
 0x499   :  { %v2525_v38 = vpop.xlane.xlu0 %881 }
 0x49a   :  { %v894_v55 = vsub.f32 %v2495_v31, %v2525_v38 }
 0x49c   :  { %v1731_v37 = vpop.eup %1730  ;;  %v907_v58 = vmul.f32 1.442695, %v894_v55  ;;  %v2611_v55 = vld [vmem:[%s2799_s13 + $0xa] sm:$0x3] }
 0x49d   :  { %v919_v24 = vsel %vm612_vm10, %v1731_v37, 0.0  ;;  %v2551_v10 = vpop.xlane.xlu1 %926 }
 0x49e   :  { %1732 = vpow2.f32 %v907_v58  ;;  %920 = vadd.xlane.f32.xlu2 %v919_v24  ;;  %v1484_v58 = vrot.slane %v2581_v4, 2 }
 0x49f   :  { %1734 = vpow2.f32 %v911_v46 }
 0x4a0   :  { %1736 = vlog2.f32 %v2540_v27 }
 0x4a1   :  { %v2531_v30 = vpop.xlane.xlu0 %914 }
 0x4a4   :  { %v1733_v3 = vpop.eup %1732 }
 0x4a5   :  { %v928_v40 = vsel %vm612_vm10, %v1733_v3, 0.0  ;;  %v1735_v42 = vpop.eup %1734 }
 0x4a6   :  { %929 = vadd.xlane.f32.xlu0 %v928_v40  ;;  %v934_v36 = vsel %vm612_vm10, %v1735_v42, 0.0  ;;  %v1506_v40 = vmul.f32 %v1498_v23, %v1498_v23  ;;  %v2646_v23 = vld [vmem:[%s2800_s14 + $0xa] sm:$0x3] }
 0x4a9   :  { %v2533_v47 = vpop.xlane.xlu0 %923 }
 0x4b5   :  { %v981_v0 = vpop.permute.xlu1 %980 }
 0x4b6   :  { %966 = vperm.xlu2 %1621, %v961_v50   ;;  %vm1019_vm0 = vcmp.eq.s32.totalorder %v1986_v28, %v981_v0 }
 0x4b7   :  { %v1027_v50 = vsel %vm1019_vm0, %v2480_v14, 0.0 }
 0x4bc   :  { %v974_v15 = vpop.permute.xlu0 %973 }
 0x4bd   :  { %vm1018_vm5 = vcmp.eq.s32.totalorder %v1986_v28, %v974_v15  ;;  %v2620_v15 = vld [vmem:[%s2800_s14 + $0x6] sm:$0x3] }
 0x4be   :  { %994 = vperm.xlu2 %1621, %v989_v13   ;;  %v1026_v51 = vsel %vm1018_vm5, %v2421_v20, 0.0  ;;  %v2549_v20 = vpop.f32.mrf.mxu1 }
 0x4bf   :  { %v1036_v16 = vsel %vm612_vm10, %v1026_v51, 0.0  ;;  %v1269_v32 = vrot.slane %v2549_v20, 1  ;;  %v1284_v5 = vsub.f32 %v2547_v54, %v2549_v20  ;;  %v1268_v2 = vrot.slane %v2549_v20, 7 }
 0x4c0   :  { %1037 = vadd.xlane.f32.xlu1 %v1036_v16  ;;  %v1270_v53 = vrot.slane %v2549_v20, 2  ;;  %v1271_v9 = vrot.slane %v2549_v20, 3  ;;  %v1272_v61 = vrot.slane %v2549_v20, 4  ;;  %v1273_v24 = vrot.slane %v2549_v20, 5 }
 0x4c1   :  { %v1292_v52 = vmul.f32 %v1284_v5, %v1284_v5  ;;  %v1285_v44 = vsub.f32 %v2560_v33, %v1269_v32  ;;  %v1283_v35 = vsub.f32 %v2565_v41, %v1268_v2  ;;  %v1499_v51 = vsub.f32 %v2601_v1, %v1483_v12 }
 0x4c2   :  { %v1286_v7 = vsub.f32 %v2573_v43, %v1270_v53  ;;  %v1287_v37 = vsub.f32 %v2589_v48, %v1271_v9  ;;  %v1497_v16 = vsub.f32 %v2606_v25, %v1482_v17  ;;  %v1288_v49 = vsub.f32 %v2611_v55, %v1272_v61  ;;  %v2636_v53 = vld [vmem:[%s2800_s14 + $0x8] sm:$0x3] }
 0x4c3   :  { %v1307_v6 = vrot.slane %v1292_v52, 7  ;;  %v1293_v39 = vmul.f32 %v1285_v44, %v1285_v44  ;;  %v1291_v22 = vmul.f32 %v1283_v35, %v1283_v35  ;;  %v1485_v5 = vrot.slane %v2581_v4, 3 }
 0x4c4   :  { %v2568_v26 = vpop.permute.xlu0 %987  ;;  %v1294_v3 = vmul.f32 %v1286_v7, %v1286_v7  ;;  %v1295_v32 = vmul.f32 %v1287_v37, %v1287_v37  ;;  %v1039_v2 = vsel %vm612_vm10, %v1027_v50, 0.0  ;;  %v1500_v52 = vsub.f32 %v2620_v15, %v1484_v58 }
 0x4c5   :  { %v1309_v13 = vrot.slane %v1293_v39, 6  ;;  %v1308_v46 = vsel %vm327_vm12, %v1307_v6, %v1291_v22  ;;  %v1521_v44 = vrot.slane %v1506_v40, 7  ;;  %v1507_v0 = vmul.f32 %v1499_v51, %v1499_v51  ;;  %v2655_v40 = vld [vmem:[%s2800_s14 + $0xc] sm:$0x3] }
 0x4c6   :  { %1015 = vperm.xlu2 %1621, %v1010_v56   ;;  %v2627_v56 = vld [vmem:[%s2799_s13 + $0xc] sm:$0x3]  ;;  %v1311_v42 = vrot.slane %v1294_v3, 5  ;;  %v1296_v9 = vmul.f32 %v1288_v49, %v1288_v49  ;;  %v1486_v7 = vrot.slane %v2581_v4, 4  ;;  %v1505_v6 = vmul.f32 %v1497_v16, %v1497_v16 }
 0x4c7   :  { %v1289_v35 = vsub.f32 %v2627_v56, %v1273_v24  ;;  %v1313_v12 = vrot.slane %v1295_v32, 4  ;;  %v1501_v39 = vsub.f32 %v2636_v53, %v1485_v5  ;;  %v1508_v61 = vmul.f32 %v1500_v52, %v1500_v52 }
 0x4c8   :  { %v1487_v58 = vrot.slane %v2581_v4, 5  ;;  %v1523_v24 = vrot.slane %v1507_v0, 6  ;;  %v1315_v3 = vrot.slane %v1296_v9, 3  ;;  %v1502_v50 = vsub.f32 %v2646_v23, %v1486_v7 }
 0x4c9   :  { %v1297_v37 = vmul.f32 %v1289_v35, %v1289_v35  ;;  %v1509_v16 = vmul.f32 %v1501_v39, %v1501_v39  ;;  %v2669_v39 = vpop.f32.mrf.mxu0  ;;  %vm1020_vm4 = vcmp.eq.s32.totalorder %v1986_v28, %v2568_v26 }
 0x4cc   :  { %v1002_v14 = vpop.permute.xlu0 %1001 }
 0x4cd   :  { %vm1022_vm6 = vcmp.eq.s32.totalorder %v1986_v28, %v1002_v14  ;;  %v1503_v14 = vsub.f32 %v2655_v40, %v1487_v58 }
 0x4ce   :  { %v1030_v22 = vsel %vm1022_vm6, %v2495_v31, 0.0  ;;  %v1525_v31 = vrot.slane %v1508_v61, 5  ;;  %v1167_v61 = vrot.slane %v2669_v39, 1  ;;  %vm1221_vm6 = vcmask 261120  }
 0x4cf   :  { %v1048_v49 = vsel %vm612_vm10, %v1030_v22, 0.0  ;;  %v1511_v35 = vmul.f32 %v1503_v14, %v1503_v14 }
 0x4d0   :  { %v1183_v58 = vsub.f32 %v2547_v54, %v1167_v61 }
 0x4d1   :  { %v1531_v7 = vrot.slane %v1511_v35, 2 }
 0x4ef   :  { %935 = vadd.xlane.f32.xlu2 %v934_v36  ;;  %v1310_v36 = vsel %vm329_vm13, %v1309_v13, %v1308_v46  ;;  %v1522_v13 = vsel %vm327_vm12, %v1521_v44, %v1505_v6  ;;  %v1317_v46 = vrot.slane %v1297_v37, 2  ;;  %v1168_v37 = vrot.slane %v2669_v39, 2 }
 0x4f0   :  { %v1312_v17 = vsel %vm331_vm14, %v1311_v42, %v1310_v36  ;;  %v1524_v32 = vsel %vm329_vm13, %v1523_v24, %v1522_v13  ;;  %v1527_v42 = vrot.slane %v1509_v16, 4  ;;  %v2676_v24 = vpop.f32.mrf.mxu2  ;;  %v1169_v13 = vrot.slane %v2669_v39, 3 }
 0x4f1   :  { %v1314_v51 = vsel %vm333_vm15, %v1313_v12, %v1312_v17  ;;  %v1526_v52 = vsel %vm331_vm14, %v1525_v31, %v1524_v32  ;;  %v1182_v16 = vsub.f32 %v2565_v41, %v2669_v39  ;;  %v1383_v31 = vrot.slane %v2676_v24, 2 }
 0x4f2   :  { %v1316_v5 = vsel %vm335_vm2, %v1315_v3, %v1314_v51  ;;  %v1528_v0 = vsel %vm333_vm15, %v1527_v42, %v1526_v52  ;;  %v1184_v3 = vsub.f32 %v2560_v33, %v1168_v37  ;;  %v1191_v51 = vmul.f32 %v1183_v58, %v1183_v58 }
 0x4f3   :  { %v1318_v44 = vsel %vm337_vm3, %v1317_v46, %v1316_v5  ;;  %v1170_v46 = vrot.slane %v2669_v39, 4  ;;  %v1185_v33 = vsub.f32 %v2573_v43, %v1169_v13  ;;  %v1274_v42 = vrot.slane %v2549_v20, 6 }
 0x4f4   :  { %v1323_v9 = vsel %vm1322_vm7, %v1318_v44, 0.0  ;;  %v1192_v54 = vmul.f32 %v1184_v3, %v1184_v3  ;;  %v1206_v32 = vrot.slane %v1191_v51, 7  ;;  %v1190_v41 = vmul.f32 %v1182_v16, %v1182_v16  ;;  %v1119_v44 = vld [vmem:[%s2799_s13 + $0xe] sm:$0x3] }
 0x4f5   :  { %v1171_v52 = vrot.slane %v2669_v39, 5  ;;  %v1399_v43 = vsub.f32 %v2601_v1, %v1383_v31  ;;  %v1384_v35 = vrot.slane %v2676_v24, 3  ;;  %v1193_v20 = vmul.f32 %v1185_v33, %v1185_v33 }
 0x4f6   :  { %v1385_v26 = vrot.slane %v2676_v24, 4  ;;  %v1028_v1 = vsel %vm1020_vm4, %v2411_v62, 0.0  ;;  %v1387_v33 = vrot.slane %v2676_v24, 6 }
 0x4f7   :  { %1040 = vadd.xlane.f32.xlu2 %v1039_v2  ;;  %v1510_v2 = vmul.f32 %v1502_v50, %v1502_v50  ;;  %v1382_v50 = vrot.slane %v2676_v24, 1  ;;  %v1407_v58 = vmul.f32 %v1399_v43, %v1399_v43  ;;  %v1488_v43 = vrot.slane %v2581_v4, 6 }
 0x4f8   :  { %v1401_v31 = vsub.f32 %v2636_v53, %v1385_v26 }
 0x4f9   :  { %v1529_v36 = vrot.slane %v1510_v2, 3  ;;  %v1398_v14 = vsub.f32 %v2579_v45, %v1382_v50  ;;  %v1186_v45 = vsub.f32 %v2589_v48, %v1170_v46  ;;  %v1400_v50 = vsub.f32 %v2620_v15, %v1384_v35 }
 0x4fb   :  { %v1530_v6 = vsel %vm335_vm2, %v1529_v36, %v1528_v0  ;;  %v1406_v36 = vmul.f32 %v1398_v14, %v1398_v14  ;;  %v1207_v0 = vsel %vm325_vm11, %v1206_v32, %v1190_v41  ;;  %v1194_v61 = vmul.f32 %v1186_v45, %v1186_v45 }
 0x4fc   :  { %v1532_v12 = vsel %vm337_vm3, %v1531_v7, %v1530_v6  ;;  %v1172_v7 = vrot.slane %v2669_v39, 6  ;;  %v1290_v6 = vsub.f32 %v1119_v44, %v1274_v42  ;;  %v1423_v14 = vrot.slane %v1407_v58, 6 }
 0x4fd   :  { %v1536_v17 = vsel %vm1322_vm7, %v1532_v12, 0.0  ;;  %v1187_v12 = vsub.f32 %v2611_v55, %v1171_v52  ;;  %v1421_v3 = vrot.slane %v1406_v36, 7  ;;  %v1210_v55 = vrot.slane %v1193_v20, 5 }
 0x4fe   :  { %v1188_v16 = vsub.f32 %v2627_v56, %v1172_v7  ;;  %v1212_v15 = vrot.slane %v1194_v61, 4  ;;  %v1408_v32 = vmul.f32 %v1400_v50, %v1400_v50  ;;  %v1298_v42 = vmul.f32 %v1290_v6, %v1290_v6  ;;  %v1127_v6 = vld [vmem:[%s2800_s14 + $0xe] sm:$0x3] }
 0x4ff   :  { %1049 = vadd.xlane.f32.xlu2 %v1048_v49  ;;  %v1195_v46 = vmul.f32 %v1187_v12, %v1187_v12 }
 0x501   :  { %v1214_v45 = vrot.slane %v1195_v46, 3 }
 0x507   :  { %1324 = vadd.xlane.f32.xlu2 %v1323_v9  ;;  %v1397_v9 = vsub.f32 %v2606_v25, %v2676_v24  ;;  %v1009_v25 = vpop.permute.xlu1 %1008 }
 0x508   :  { %vm1023_vm5 = vcmp.eq.s32.totalorder %v1986_v28, %v1009_v25 }
 0x509   :  { %v1405_v51 = vmul.f32 %v1397_v9, %v1397_v9  ;;  %v1031_v52 = vsel %vm1023_vm5, %v2435_v59, 0.0  ;;  %v1425_v9 = vrot.slane %v1408_v32, 5 }
 0x50a   :  { %v1051_v7 = vsel %vm612_vm10, %v1031_v52, 0.0 }
 0x50b   :  { %v1422_v56 = vsel %vm325_vm11, %v1421_v3, %v1405_v51 }
 0x50c   :  { %v1424_v35 = vsel %vm327_vm12, %v1423_v14, %v1422_v56  ;;  %v1737_v14 = vpop.eup %1736 }
 0x50f   :  { %1537 = vadd.xlane.f32.xlu2 %v1536_v17  ;;  %v1173_v17 = vrot.slane %v2669_v39, 7  ;;  %v1042_v39 = vsel %vm612_vm10, %v1028_v1, 0.0 }
 0x511   :  { %v2672_v22 = vpop.xlane.xlu2 %920 }
 0x512   :  { %1738 = vlog2.f32 %v2672_v22 }
 0x513   :  { %1740 = vlog2.f32 %v2531_v30 }
 0x514   :  { %1742 = vlog2.f32 %v2551_v10 }
 0x515   :  { %1744 = vlog2.f32 %v2533_v47 }
 0x518   :  { %v1739_v32 = vpop.eup %1738 }
 0x519   :  { %v967_v49 = vpop.permute.xlu2 %966  ;;  %v1741_v56 = vpop.eup %1740 }
 0x51a   :  { %vm1017_vm8 = vcmp.eq.s32.totalorder %v1986_v28, %v967_v49  ;;  %v1386_v49 = vrot.slane %v2676_v24, 5  ;;  %v1743_v52 = vpop.eup %1742 }
 0x51b   :  { %v1025_v5 = vsel %vm1017_vm8, %v2401_v57, 0.0  ;;  %v1208_v57 = vrot.slane %v1192_v54, 6  ;;  %v946_v47 = vmul.f32 0.6931472, %v1743_v52 }
 0x51c   :  { %v1033_v2 = vsel %vm612_vm10, %v1025_v5, 0.0  ;;  %v1196_v5 = vmul.f32 %v1188_v16, %v1188_v16  ;;  %v1402_v53 = vsub.f32 %v2646_v23, %v1386_v49  ;;  %v1403_v23 = vsub.f32 %v2655_v40, %v1387_v33  ;;  %v930_v33 = vpop.xlane.xlu0 %929 }
 0x51d   :  { %1034 = vadd.xlane.f32.xlu0 %v1033_v2  ;;  %v1209_v37 = vsel %vm327_vm12, %v1208_v57, %v1207_v0  ;;  %v1409_v57 = vmul.f32 %v1401_v31, %v1401_v31  ;;  %v1388_v0 = vrot.slane %v2676_v24, 7  ;;  %v1319_v40 = vrot.slane %v1298_v42, 1 }
 0x51e   :  { %v1211_v54 = vsel %vm329_vm13, %v1210_v55, %v1209_v37  ;;  %v1216_v4 = vrot.slane %v1196_v5, 2  ;;  %v1410_v12 = vmul.f32 %v1402_v53, %v1402_v53  ;;  %v1504_v37 = vsub.f32 %v1127_v6, %v1488_v43  ;;  %v1745_v43 = vpop.eup %1744 }
 0x51f   :  { %v1213_v2 = vsel %vm331_vm14, %v1212_v15, %v1211_v54  ;;  %v1427_v24 = vrot.slane %v1409_v57, 4  ;;  %v1404_v1 = vsub.f32 %v1127_v6, %v1388_v0  ;;  %v933_v15 = vpop.xlane.xlu1 %932  ;;  %v940_v5 = vmul.f32 0.6931472, %v1737_v14 }
 0x520   :  { %v1215_v20 = vsel %vm333_vm15, %v1214_v45, %v1213_v2  ;;  %v1429_v3 = vrot.slane %v1410_v12, 3  ;;  %v1512_v16 = vmul.f32 %v1504_v37, %v1504_v37  ;;  %v942_v2 = vmul.f32 0.6931472, %v1739_v32 }
 0x521   :  { %v995_v48 = vpop.permute.xlu2 %994  ;;  %v1217_v26 = vsel %vm335_vm2, %v1216_v4, %v1215_v20  ;;  %v1412_v25 = vmul.f32 %v1404_v1, %v1404_v1  ;;  %v938_v42 = vmul.f32 0.6931472, %v1741_v56  ;;  %v954_v27 = vadd.f32 %v940_v5, %v2470_v11 }
 0x522   :  { %vm1021_vm9 = vcmp.eq.s32.totalorder %v1986_v28, %v995_v48  ;;  %v1533_v49 = vrot.slane %v1512_v16, 1  ;;  %v955_v22 = vadd.f32 %v942_v2, %v2521_v60  ;;  %1746 = vlog2.f32 %v930_v33 }
 0x523   :  { %v1029_v13 = vsel %vm1021_vm9, %v2428_v63, 0.0  ;;  %v1189_v63 = vsub.f32 %v1119_v44, %v1173_v17  ;;  %v1411_v17 = vmul.f32 %v1403_v23, %v1403_v23  ;;  %v953_v45 = vadd.f32 %v938_v42, %v2473_v18 }
 0x524   :  { %v1045_v62 = vsel %vm612_vm10, %v1029_v13, 0.0  ;;  %1748 = vlog2.f32 %v933_v15 }
 0x525   :  { %1046 = vadd.xlane.f32.xlu1 %v1045_v62  ;;  %1043 = vadd.xlane.f32.xlu0 %v1042_v39  ;;  %v1197_v44 = vmul.f32 %v1189_v63, %v1189_v63  ;;  %v1431_v51 = vrot.slane %v1411_v17, 2  ;;  %v1433_v39 = vrot.slane %v1412_v25, 1 }
 0x527   :  { %v1218_v48 = vrot.slane %v1197_v44, 1 }
 0x528   :  { %v1747_v60 = vpop.eup %1746 }
 0x529   :  { %v1016_v41 = vpop.permute.xlu2 %1015  ;;  %v1219_v58 = vsel %vm337_vm3, %v1218_v48, %v1217_v26  ;;  %v948_v6 = vmul.f32 0.6931472, %v1747_v60 }
 0x52a   :  { %vm1024_vm0 = vcmp.eq.s32.totalorder %v1986_v28, %v1016_v41  ;;  %v1222_v13 = vsel %vm1221_vm6, %v1219_v58, 0.0  ;;  %v1749_v23 = vpop.eup %1748 }
 0x52b   :  { %v1032_v36 = vsel %vm1024_vm0, %v2508_v34, 0.0  ;;  %v1426_v34 = vsel %vm329_vm13, %v1425_v9, %v1424_v35  ;;  %v944_v35 = vmul.f32 0.6931472, %v1745_v43  ;;  %v950_v48 = vmul.f32 0.6931472, %v1749_v23 }
 0x52c   :  { %v1054_v59 = vsel %vm612_vm10, %v1032_v36, 0.0  ;;  %v1428_v61 = vsel %vm331_vm14, %v1427_v24, %v1426_v34  ;;  %vm1326_vm10 = vcmask 253952  }
 0x52d   :  { %1055 = vadd.xlane.f32.xlu1 %v1054_v59  ;;  %1052 = vadd.xlane.f32.xlu0 %v1051_v7  ;;  %v1430_v50 = vsel %vm333_vm15, %v1429_v3, %v1428_v61  ;;  %v1327_v55 = vsel %vm1326_vm10, %v1319_v40, 0.0  ;;  %v1539_v54 = vsel %vm1326_vm10, %v1533_v49, 0.0  ;;  %v957_v59 = vadd.f32 %v946_v47, %v2486_v19 }
 0x52e   :  { %v1432_v62 = vsel %vm335_vm2, %v1431_v51, %v1430_v50  ;;  %v956_v7 = vadd.f32 %v944_v35, %v2490_v29  ;;  %v958_v61 = vadd.f32 %v948_v6, %v2525_v38  ;;  %v959_v25 = vadd.f32 %v950_v48, %v2515_v8  ;;  %v1753_v8 = vld [vmem:[%s2805_s28] ss:$0 sm:$0xff]  ;;  %s1592_s28 = spop %1591 }
 0x52f   :  { %v1434_v31 = vsel %vm337_vm3, %v1433_v39, %v1432_v62  ;;  %s1594_s1 = spop %1593  ;;  %s84_s10 = smul.f32 0.0625, %s1592_s28 }
 0x530   :  { %v1436_v46 = vsel %vm1221_vm6, %v1434_v31, 0.0  ;;  %s1596_s22 = spop %1595 }
 0x531   :  { %s1598_s23 = spop %1597  ;;  %s602_s4 = sadd.f32 %s1596_s22, %s1594_s1 }
 0x533   :  { %v1038_v41 = vpop.xlane.xlu1 %1037 }
 0x534   :  { %v1058_v30 = vsub.f32 %v954_v27, %v1038_v41 }
 0x535   :  { %1223 = vadd.xlane.f32.xlu1 %v1222_v13  ;;  %1328 = vadd.xlane.f32.xlu0 %v1327_v55 }
 0x536   :  { %v1082_v36 = vperm.slane %v1058_v30, %v1986_v28 }
 0x53d   :  { %1437 = vadd.xlane.f32.xlu1 %v1436_v46  ;;  %1540 = vadd.xlane.f32.xlu0 %v1539_v54 }
 0x562   :  { %v936_v63 = vpop.xlane.xlu2 %935 }
 0x563   :  { %1750 = vlog2.f32 %v936_v63 }
 0x569   :  { %v1751_v4 = vpop.eup %1750 }
 0x56a   :  { %v1041_v53 = vpop.xlane.xlu2 %1040  ;;  %v952_v1 = vmul.f32 0.6931472, %v1751_v4 }
 0x56b   :  { %v1059_v44 = vsub.f32 %v955_v22, %v1041_v53 }
 0x56c   :  { %v960_v3 = vadd.f32 %v952_v1, %v2538_v21 }
 0x56d   :  { %v1083_v11 = vperm.slane %v1059_v44, %v1986_v28 }
 0x572   :  { %v1050_v0 = vpop.xlane.xlu2 %1049 }
 0x573   :  { %v1062_v58 = vsub.f32 %v958_v61, %v1050_v0 }
 0x575   :  { %v1086_v16 = vperm.slane %v1062_v58, %v1986_v28 }
 0x57a   :  { %v1325_v29 = vpop.xlane.xlu2 %1324 }
 0x57b   :  { %v1330_v39 = vmax.f32 %v1325_v29, 1e-12 }
 0x57d   :  { %v1332_v54 = vmin.f32 %v1330_v39, 1e+12 }
 0x57f   :  { %v1337_v2 = vrot.slane %v1332_v54, 1 }
 0x590   :  { %v1035_v57 = vpop.xlane.xlu0 %1034 }
 0x591   :  { %v1057_v10 = vsub.f32 %v953_v45, %v1035_v57 }
 0x593   :  { %v1081_v20 = vperm.slane %v1057_v10, %v1986_v28 }
 0x595   :  { %v1089_v9 = vsel %vm325_vm11, %v1082_v36, %v1081_v20  ;;  %vm1227_vm11 = vcmask 7168  }
 0x596   :  { %v1090_v18 = vsel %vm327_vm12, %v1083_v11, %v1089_v9  ;;  %vm1336_vm12 = vcmask 1046528  }
 0x598   :  { %v1047_v12 = vpop.xlane.xlu1 %1046  ;;  %v1044_v34 = vpop.xlane.xlu0 %1043 }
 0x599   :  { %v1061_v26 = vsub.f32 %v957_v59, %v1047_v12  ;;  %v1060_v24 = vsub.f32 %v956_v7, %v1044_v34 }
 0x59b   :  { %v1085_v40 = vperm.slane %v1061_v26, %v1986_v28  ;;  %v1084_v17 = vperm.slane %v1060_v24, %v1986_v28 }
 0x59d   :  { %v1091_v37 = vsel %vm329_vm13, %v1084_v17, %v1090_v18 }
 0x59e   :  { %v1092_v19 = vsel %vm331_vm14, %v1085_v40, %v1091_v37 }
 0x59f   :  { %v1093_v49 = vsel %vm333_vm15, %v1086_v16, %v1092_v19 }
 0x5a0   :  { %v1056_v50 = vpop.xlane.xlu1 %1055  ;;  %v1053_v13 = vpop.xlane.xlu0 %1052 }
 0x5a1   :  { %v1064_v55 = vsub.f32 %v960_v3, %v1056_v50  ;;  %v1063_v51 = vsub.f32 %v959_v25, %v1053_v13 }
 0x5a3   :  { %v1088_v62 = vperm.slane %v1064_v55, %v1986_v28  ;;  %v1087_v38 = vperm.slane %v1063_v51, %v1986_v28  ;;  %v1538_v28 = vpop.xlane.xlu2 %1537 }
 0x5a4   :  { %v1542_v42 = vmax.f32 %v1538_v28, 1e-12 }
 0x5a5   :  { %v1094_v31 = vsel %vm335_vm2, %v1087_v38, %v1093_v49 }
 0x5a6   :  { %v1095_v46 = vsel %vm337_vm3, %v1088_v62, %v1094_v31  ;;  %v1544_v45 = vmin.f32 %v1542_v42, 1e+12 }
 0x5a7   :  { %v1097_v21 = vmul.f32 %v1753_v8, %v1095_v46 }
 0x5a8   :  { %v1224_v63 = vpop.xlane.xlu1 %1223  ;;  %v1329_v15 = vpop.xlane.xlu0 %1328  ;;  %v1548_v47 = vrot.slane %v1544_v45, 1 }
 0x5a9   :  { %v1225_v14 = vmax.f32 %v1224_v63, 1e-12  ;;  %v1331_v32 = vmax.f32 %v1329_v15, 1e-12  ;;  %v1098_v56 = vsel %vm64_vm1, %v1097_v21, 0.0 }
 0x5aa   :  { %1099 = vadd.xlane.f32.xlu2 %v1098_v56 }
 0x5ab   :  { %v1226_v33 = vmin.f32 %v1225_v14, 1e+12  ;;  %v1333_v5 = vmin.f32 %v1331_v32, 1e+12 }
 0x5ad   :  { %v1338_v53 = vrot.slane %v1333_v5, 1  ;;  %v1228_v41 = vsel %vm1227_vm11, %v1226_v33, 0.0 }
 0x5ae   :  { %1229 = vadd.xlane.f32.xlu0 %v1228_v41 }
 0x5af   :  { %v1339_v27 = vsel %vm1336_vm12, %v1337_v2, %v1338_v53 }
 0x5b0   :  { %v1438_v22 = vpop.xlane.xlu1 %1437  ;;  %v1541_v52 = vpop.xlane.xlu0 %1540  ;;  %v1341_v30 = vsel %vm1227_vm11, %v1339_v27, 0.0 }
 0x5b1   :  { %v1439_v43 = vmax.f32 %v1438_v22, 1e-12  ;;  %v1543_v44 = vmax.f32 %v1541_v52, 1e-12  ;;  %1342 = vadd.xlane.f32.xlu1 %v1341_v30 }
 0x5b3   :  { %v1440_v57 = vmin.f32 %v1439_v43, 1e+12  ;;  %v1545_v10 = vmin.f32 %v1543_v44, 1e+12 }
 0x5b5   :  { %v1549_v35 = vrot.slane %v1545_v10, 1  ;;  %v1441_v36 = vsel %vm1227_vm11, %v1440_v57, 0.0 }
 0x5b6   :  { %1442 = vadd.xlane.f32.xlu2 %v1441_v36 }
 0x5b7   :  { %v1550_v20 = vsel %vm1336_vm12, %v1548_v47, %v1549_v35 }
 0x5b8   :  { %v1552_v11 = vsel %vm1227_vm11, %v1550_v20, 0.0 }
 0x5b9   :  { %1553 = vadd.xlane.f32.xlu0 %v1552_v11 }
 0x61d   :  { %v1100_v60 = vpop.xlane.xlu2 %1099 }
 0x61e   :  { %v1101_v0 = vrot.slane %v1100_v60, 4 }
 0x620   :  { %v1102_v9 = vadd.f32 %v1101_v0, %v1100_v60 }
 0x621   :  { %v1230_v18 = vpop.xlane.xlu0 %1229 }
 0x622   :  { %v1103_v23 = vrot.slane %v1102_v9, 2  ;;  %v1231_v59 = vrot.slane %v1230_v18, 4 }
 0x624   :  { %v1232_v7 = vadd.f32 %v1231_v59, %v1230_v18  ;;  %v1343_v4 = vpop.xlane.xlu1 %1342  ;;  %v1104_v6 = vadd.f32 %v1103_v23, %v1102_v9 }
 0x625   :  { %v1344_v12 = vrot.slane %v1343_v4, 4 }
 0x626   :  { %v1233_v34 = vrot.slane %v1232_v7, 2  ;;  %v1105_v26 = vrot.slane %v1104_v6, 1 }
 0x627   :  { %v1345_v24 = vadd.f32 %v1344_v12, %v1343_v4 }
 0x628   :  { %v1106_v48 = vadd.f32 %v1105_v26, %v1104_v6  ;;  %v1234_v1 = vadd.f32 %v1233_v34, %v1232_v7 }
 0x629   :  { %v1346_v40 = vrot.slane %v1345_v24, 2  ;;  %v1443_v17 = vpop.xlane.xlu2 %1442 }
 0x62a   :  { %v1444_v61 = vrot.slane %v1443_v17, 4  ;;  %1599 = vpush %v1106_v48  ;;  %v1235_v37 = vrot.slane %v1234_v1, 1 }
 0x62b   :  { %v1347_v58 = vadd.f32 %v1346_v40, %v1345_v24 }
 0x62c   :  { %v1445_v19 = vadd.f32 %v1444_v61, %v1443_v17  ;;  %v1554_v29 = vpop.xlane.xlu0 %1553  ;;  %v1236_v3 = vadd.f32 %v1235_v37, %v1234_v1 }
 0x62d   :  { %v1555_v25 = vrot.slane %v1554_v29, 4  ;;  %v1348_v50 = vrot.slane %v1347_v58, 1 }
 0x62e   :  { %v1446_v13 = vrot.slane %v1445_v19, 2  ;;  %1601 = vpush %v1236_v3 }
 0x62f   :  { %v1556_v55 = vadd.f32 %v1555_v25, %v1554_v29  ;;  %v1349_v51 = vadd.f32 %v1348_v50, %v1347_v58 }
 0x630   :  { %v1447_v16 = vadd.f32 %v1446_v13, %v1445_v19 }
 0x631   :  { %v1557_v62 = vrot.slane %v1556_v55, 2  ;;  %1603 = vpush %v1349_v51 }
 0x632   :  { %v1448_v38 = vrot.slane %v1447_v16, 1 }
 0x633   :  { %v1558_v39 = vadd.f32 %v1557_v62, %v1556_v55 }
 0x634   :  { %v1449_v49 = vadd.f32 %v1448_v38, %v1447_v16 }
 0x635   :  { %v1559_v31 = vrot.slane %v1558_v39, 1 }
 0x636   :  { %1605 = vpush %v1449_v49 }
 0x637   :  { %v1560_v46 = vadd.f32 %v1559_v31, %v1558_v39 }
 0x639   :  { %1607 = vpush %v1560_v46 }
 0x65b   :  { %s1600_s24 = spop %1599 }
 0x65c   :  { %s1108_s15 = sadd.f32 %s1600_s24, %s1598_s23 }
 0x65e   :  { %s1109_s2 = smul.f32 2.0, %s1108_s15 }
 0x65f   :  { %s1602_s3 = spop %1601 }
 0x660   :  { %s1110_s7 = sadd.f32 %s1109_s2, %s602_s4 }
 0x662   :  { %s1604_s25 = spop %1603  ;;  %s1111_s9 = smul.f32 0.125, %s1110_s7 }
 0x663   :  { %s1351_s26 = sadd.f32 %s1604_s25, %s1602_s3 }
 0x664   :  { %s1564_s18 = sadd.f32 %s1111_s9, %s84_s10 }
 0x667   :  { %s1606_s11 = spop %1605 }
 0x668   :  { %s1451_s6 = sadd.f32 %s1606_s11, %s1351_s26 }
 0x66a   :  { %s1608_s27 = spop %1607 }
 0x66b   :  { %s1562_s5 = sadd.f32 %s1608_s27, %s1451_s6 }
 0x66d   :  { %s1563_s17 = smul.f32 0.00125, %s1562_s5 }
 0x66f   :  { %s1565_s8 = sadd.f32 %s1564_s18, %s1563_s17 }
 0x671   :  { %1567 = sst [smem:[#allocation2]] %s1565_s8 }
 0x672   :  { %1576 = dma.smem_to_hbm %s1771_s12, 16, %s1574_s0, [#allocation3]  }
 0x673   :  { %1766 = dma.done.wait [#allocation3], 16  }
 0x674   :  { %1767 = vsyncadd [#allocation3], 4294967280 }
 0x675   :  { %1581 = sfence }
 0x676   :  { %1582 = vsyncpa [#allocation3], 1 }

</bundles_post_ra>
